<compile_context>
chip_gen: v7x
topology: tpu7x:2x2x1
jax: 0.10.0
libtpu: 0.0.40
codegen_flags: <defaults>
</compile_context>

<pallas_src>
import jax
import jax.numpy as jnp
from jax import lax
from jax.experimental import pallas as pl
from jax.experimental.pallas import tpu as pltpu

LANE = 128                         # lane width (last dim)
CHUNK = 16                         # rows per strip-mined slab (2 f32 vregs/temp, bf16-tile friendly)
PAD_LOGIT = -1e9                   # sigmoid(PAD)==0 and BCE(PAD, 0)==0 exactly
VMEM_STEP_BUDGET = 16 * 1024 * 1024  # double-buffered per-step input footprint (safe on v7x)


def _round_up(a, b):
    return -(-a // b) * b


def _is_v7x():
    try:
        kind = jax.devices()[0].device_kind.lower()
    except Exception:
        return False
    return "7" in kind


def _as_float(a):
    a = jnp.asarray(a)
    if a.dtype == jnp.float32 or a.dtype == jnp.bfloat16:
        return a                    # keep bf16 as bf16: halves HBM bytes, upcast in-kernel
    return a.astype(jnp.float32)


def _prep_2d(a, m):
    """Flatten and view as (m//128, 128).  Free (bitcast) when a.size == m."""
    flat = a.reshape(-1)
    if flat.shape[0] != m:
        flat = jnp.pad(flat, (0, m - flat.shape[0]))   # only for non-2048-aligned sizes
    return flat.reshape(m // LANE, LANE)


def _make_kernel(n_preds, block_rows, tiles_per_core):
    """Kernel over one (block_rows, 128) row tile of every prediction + label.

    args: n_ref (SMEM, scalar-prefetched true element count),
          x_0..x_{P-1}, y  (VMEM row tiles),
          out_ref (P, 4, 8, 128) resident partial sums:
              row 0: sum(BCE elemwise), 1: sum(sig*y), 2: sum(sig), 3: sum(y) (p==0 only)
    """
    n_chunks = block_rows // CHUNK

    def _fold(t):  # (CHUNK, 128) -> (8, 128): vreg-aligned partial sums, pure VPU adds
        return t.reshape(-1, 8, LANE).sum(axis=0)

    def kernel(n_ref, *refs):
        x_refs = refs[:n_preds]
        y_ref = refs[n_preds]
        out_ref = refs[n_preds + 1]

        c = pl.program_id(0)                     # core / leading axis
        i = pl.program_id(1)                     # row-tile (reduction) axis

        @pl.when(i == 0)
        def _init():
            out_ref[...] = jnp.zeros_like(out_ref)

        n_valid = n_ref[0]
        row0 = (c * tiles_per_core + i) * block_rows          # intended first global row
        tile_full = (row0 + block_rows) * LANE <= n_valid     # tile has no invalid elements

        def accumulate(masked):
            zeros = jnp.zeros((8, LANE), jnp.float32)

            def chunk_body(k, carry):
                y_acc, accs = carry
                r0 = pl.multiple_of(k * CHUNK, CHUNK)
                y = y_ref[pl.ds(r0, CHUNK), :].astype(jnp.float32)
                if masked:
                    gidx = (row0 + r0
                            + lax.broadcasted_iota(jnp.int32, (CHUNK, LANE), 0)) * LANE \
                           + lax.broadcasted_iota(jnp.int32, (CHUNK, LANE), 1)
                    valid = gidx < n_valid
                    y = jnp.where(valid, y, 0.0)
                y_acc = y_acc + _fold(y)

                new_accs = []
                for p in range(n_preds):          # static unroll over the few predictions
                    x = x_refs[p][pl.ds(r0, CHUNK), :].astype(jnp.float32)
                    if masked:
                        x = jnp.where(valid, x, PAD_LOGIT)   # -> exact 0 contribution
                    # Shared transcendental: e = exp(-|x|) feeds BCE and sigmoid.
                    e = jnp.exp(-jnp.abs(x))
                    # Stable BCE-with-logits: max(x,0) - x*y + log(1 + exp(-|x|))
                    bce = jnp.maximum(x, 0.0) - x * y + jnp.log1p(e)
                    # EUP reciprocal (approx) instead of VALU Newton divide.
                    r = pl.reciprocal(1.0 + e, approx=True)
                    s = jnp.where(x >= 0.0, r, 1.0 - r)      # sigmoid(x)
                    if masked:
                        s = jnp.where(valid, s, 0.0)         # don't rely on rcp(1.0)==1 exactly
                    a_bce, a_sy, a_s = accs[p]
                    new_accs.append((a_bce + _fold(bce),
                                     a_sy + _fold(s * y),
                                     a_s + _fold(s)))
                return y_acc, tuple(new_accs)

            init = (zeros, tuple((zeros, zeros, zeros) for _ in range(n_preds)))
            y_acc, accs = lax.fori_loop(0, n_chunks, chunk_body, init)

            out_ref[0, 3] += y_acc               # label sum accumulated once, not per prediction
            for p in range(n_preds):
                out_ref[p, 0] += accs[p][0]
                out_ref[p, 1] += accs[p][1]
                out_ref[p, 2] += accs[p][2]

        @pl.when(tile_full)
        def _fast():
            accumulate(masked=False)             # zero masking cost on interior tiles

        @pl.when(jnp.logical_not(tile_full))
        def _tail():
            accumulate(masked=True)              # ragged tail / phantom tiles fully masked

    return kernel


def _multi_bus_loss_impl(predict_list, prediction, label, ep, alpha, *, ncores, core_parallel):
    # The reference module feeds every scale at label resolution (BCE needs same shape).
    preds = [_as_float(p) for p in predict_list] + [_as_float(prediction)]
    label = _as_float(label)
    n_preds = len(preds)
    n = label.size
    for p in preds:
        if p.size != n:
            raise ValueError("MultiBUSLoss: every prediction must have label.size elements")

    m = _round_up(n, CHUNK * LANE)
    rows = m // LANE                              # multiple of CHUNK
    xs = [_prep_2d(p, m) for p in preds]
    y2d = _prep_2d(label, m)

    # Row-block size from an explicit double-buffered VMEM budget (review item 10).
    itemsize = max([x.dtype.itemsize for x in xs] + [y2d.dtype.itemsize])
    budget_rows = VMEM_STEP_BUDGET // (2 * (n_preds + 1) * LANE * itemsize)
    block_rows = max(CHUNK, min(rows, (budget_rows // CHUNK) * CHUNK))
    total_tiles = -(-rows // block_rows)
    tiles_per_core = -(-total_tiles // ncores)

    kernel = _make_kernel(n_preds, block_rows, tiles_per_core)

    def row_map(c, i, n_ref):                     # clamp phantom tiles; kernel masks them to 0
        t = c * tiles_per_core + i
        return (jnp.minimum(t, total_tiles - 1), 0)

    in_specs = [pl.BlockSpec((block_rows, LANE), row_map) for _ in range(n_preds + 1)]
    out_spec = pl.BlockSpec((n_preds, 4, 8, LANE), lambda c, i, n_ref: (c, 0, 0, 0))

    dims = (pltpu.CORE_PARALLEL if core_parallel else pltpu.ARBITRARY, pltpu.ARBITRARY)

    partial = pl.pallas_call(
        kernel,
        out_shape=jax.ShapeDtypeStruct((ncores * n_preds, 4, 8, LANE), jnp.float32),
        grid_spec=pltpu.PrefetchScalarGridSpec(
            num_scalar_prefetch=1,
            grid=(ncores, tiles_per_core),
            in_specs=in_specs,
            out_specs=out_spec,
        ),
        compiler_params=pltpu.CompilerParams(dimension_semantics=dims),
    )(jnp.array([n], jnp.int32), *xs, y2d)

    # Tiny final reduce: (ncores*P,4,8,128) -> (P,4)
    sums = partial.reshape(ncores, n_preds, 4, 8 * LANE).sum(axis=(0, 3))
    label_sum = sums[0, 3]
    bce = sums[:, 0] / n
    dice = 1.0 - (2.0 * sums[:, 1] + ep) / (sums[:, 2] + label_sum + ep)
    per_pred = bce + 0.1 * dice                  # (P,)

    num = len(predict_list)
    w = jnp.array([1.0 / (num - idx) for idx in range(num)], jnp.float32)
    ig_loss = jnp.sum(w * per_pred[:num])        # IGBUSLoss over the scales
    pi_loss = per_pred[num]                      # primary prediction term
    return alpha * ig_loss + (1.0 - alpha) * pi_loss


_impl_jit = jax.jit(_multi_bus_loss_impl, static_argnames=("ncores", "core_parallel"))


def multi_bus_loss(predict_list, prediction, label, ep=1e-6, alpha=0.4):
    """JAX/Pallas equivalent of MultiBUSLoss.forward."""
    ncores = 2 if _is_v7x() else 1               # real 2-TC sharding only on v7x
    args = (tuple(predict_list), prediction, label, ep, alpha)
    try:
        return _impl_jit(*args, ncores=ncores, core_parallel=(ncores == 2))
    except Exception:
        if ncores == 1:
            raise
        # Conservative fallback if CORE_PARALLEL is rejected on this toolchain.
        return _impl_jit(*args, ncores=1, core_parallel=False)


# --------------------------- pure-JAX reference ---------------------------
def _ref_bce(x, y):
    return jnp.mean(jnp.maximum(x, 0.0) - x * y + jnp.log1p(jnp.exp(-jnp.abs(x))))


def _ref_dice(p, y, ep):
    inter = 2.0 * jnp.sum(p * y) + ep
    union = jnp.sum(p) + jnp.sum(y) + ep
    return 1.0 - inter / union


def multi_bus_loss_ref(predict_list, prediction, label, ep=1e-6, alpha=0.4):
    num = len(predict_list)
    ig = 0.0
    for idx, p in enumerate(predict_list):
        ig += (1.0 / (num - idx)) * (
            _ref_bce(p, label) + 0.1 * _ref_dice(jax.nn.sigmoid(p), label, ep))
    pi = _ref_bce(prediction, label) + 0.1 * _ref_dice(jax.nn.sigmoid(prediction), label, ep)
    return alpha * ig + (1.0 - alpha) * pi


# --------------------------------- main -----------------------------------
if __name__ == "__main__":
    key = jax.random.PRNGKey(0)
    B, C, H, W = 2, 1, 16, 16        # small shapes consistent with a segmentation loss
    n_scales = 3                      # len(predict_list)

    keys = jax.random.split(key, n_scales + 2)
    predict_list = [
        jax.random.normal(keys[i], (B, C, H, W), jnp.float32) for i in range(n_scales)
    ]
    prediction = jax.random.normal(keys[n_scales], (B, C, H, W), jnp.float32)
    label = (jax.random.uniform(keys[n_scales + 1], (B, C, H, W)) > 0.5).astype(jnp.float32)

    loss = jax.block_until_ready(multi_bus_loss(predict_list, prediction, label))
    ref = jax.block_until_ready(multi_bus_loss_ref(predict_list, prediction, label))

    # Tolerance 2e-4: the approximate EUP reciprocal (perf-review item) carries
    # ~2^-12 relative error on the sigmoid; everything else is exact f32.
    assert jnp.allclose(loss, ref, rtol=2e-4, atol=2e-4), (loss, ref)

    print("KERNEL_OK")
</pallas_src>

<mosaic_0001>
module attributes {stable_mosaic.version = 11 : i64} {
  func.func @kernel(%arg0: i32, %arg1: i32, %arg2: memref<1xi32, #tpu.memory_space<smem>>, %arg3: memref<16x128xf32, #tpu.memory_space<vmem>>, %arg4: memref<16x128xf32, #tpu.memory_space<vmem>>, %arg5: memref<16x128xf32, #tpu.memory_space<vmem>>, %arg6: memref<16x128xf32, #tpu.memory_space<vmem>>, %arg7: memref<16x128xf32, #tpu.memory_space<vmem>>, %arg8: memref<4x4x8x128xf32, #tpu.memory_space<vmem>>) attributes {dimension_semantics = [#tpu.dimension_semantics<arbitrary>, #tpu.dimension_semantics<arbitrary>], iteration_bounds = array<i64: 1, 1>, scalar_prefetch = 1 : i64, scratch_operands = 0 : i64, tpu.core_type = #tpu.core_type<tc>, window_params = [{transform_indices = @transform_0, window_bounds = array<i64: 16, 128>}, {transform_indices = @transform_1, window_bounds = array<i64: 16, 128>}, {transform_indices = @transform_2, window_bounds = array<i64: 16, 128>}, {transform_indices = @transform_3, window_bounds = array<i64: 16, 128>}, {transform_indices = @transform_4, window_bounds = array<i64: 16, 128>}, {transform_indices = @transform_5, window_bounds = array<i64: 4, 4, 8, 128>}]} {
    %c0_i32 = arith.constant 0 : i32
    %0 = arith.cmpi eq, %arg1, %c0_i32 : i32
    %1 = arith.extui %0 : i1 to i32
    %c0_i32_0 = arith.constant 0 : i32
    %2 = arith.cmpi ne, %1, %c0_i32_0 : i32
    scf.if %2 {
      %cst = arith.constant 0.000000e+00 : f32
      %15 = vector.broadcast %cst : f32 to vector<4x4x8x128xf32>
      %c0_4 = arith.constant 0 : index
      %c0_5 = arith.constant 0 : index
      %c0_6 = arith.constant 0 : index
      %c0_7 = arith.constant 0 : index
      %16 = vector.load %arg8[%c0_4, %c0_5, %c0_6, %c0_7] : memref<4x4x8x128xf32, #tpu.memory_space<vmem>>, vector<4x4x8x128xf32>
      tpu.vector_store %arg8[%c0_4, %c0_5, %c0_6, %c0_7], %15 {strides = array<i32>} : memref<4x4x8x128xf32, #tpu.memory_space<vmem>>, vector<4x4x8x128xf32>,
    } else {
    }
    %c0 = arith.constant 0 : index
    %3 = memref.load %arg2[%c0] : memref<1xi32, #tpu.memory_space<smem>>
    %c1_i32 = arith.constant 1 : i32
    %4 = arith.muli %arg0, %c1_i32 : i32
    %5 = arith.addi %4, %arg1 : i32
    %c16_i32 = arith.constant 16 : i32
    %6 = arith.muli %5, %c16_i32 : i32
    %c16_i32_1 = arith.constant 16 : i32
    %7 = arith.addi %6, %c16_i32_1 : i32
    %c128_i32 = arith.constant 128 : i32
    %8 = arith.muli %7, %c128_i32 : i32
    %9 = arith.cmpi sle, %8, %3 : i32
    %10 = arith.extui %9 : i1 to i32
    %c0_i32_2 = arith.constant 0 : i32
    %11 = arith.cmpi ne, %10, %c0_i32_2 : i32
    scf.if %11 {
      %cst = arith.constant 0.000000e+00 : f32
      %15 = vector.broadcast %cst : f32 to vector<8x128xf32>
      %c0_i32_4 = arith.constant 0 : i32
      %c16_i32_5 = arith.constant 16 : i32
      %16 = arith.muli %c0_i32_4, %c16_i32_5 : i32
      %17 = tpu.assume_multiple %16, 16 : i32
      %18 = arith.index_cast %17 : i32 to index
      %c0_6 = arith.constant 0 : index
      %19 = vector.load %arg7[%18, %c0_6] : memref<16x128xf32, #tpu.memory_space<vmem>>, vector<16x128xf32>
      %20 = vector.shape_cast %19 : vector<16x128xf32> to vector<2x8x128xf32>
      %cst_7 = arith.constant dense<0.000000e+00> : vector<8x128xf32>
      %21 = vector.multi_reduction <add>, %20, %cst_7 [0] : vector<2x8x128xf32> to vector<8x128xf32>
      %22 = arith.addf %15, %21 : vector<8x128xf32>
      %23 = arith.index_cast %17 : i32 to index
      %c0_8 = arith.constant 0 : index
      %24 = vector.load %arg3[%23, %c0_8] : memref<16x128xf32, #tpu.memory_space<vmem>>, vector<16x128xf32>
      %25 = math.absf %24 : vector<16x128xf32>
      %cst_9 = arith.constant 0.000000e+00 : f32
      %26 = vector.broadcast %cst_9 : f32 to vector<16x128xf32>
      %27 = arith.subf %26, %25 : vector<16x128xf32>
      %28 = math.exp %27 : vector<16x128xf32>
      %cst_10 = arith.constant 0.000000e+00 : f32
      %29 = vector.broadcast %cst_10 : f32 to vector<16x128xf32>
      %30 = arith.maximumf %24, %29 : vector<16x128xf32>
      %31 = arith.mulf %24, %19 : vector<16x128xf32>
      %32 = arith.subf %30, %31 : vector<16x128xf32>
      %33 = math.log1p %28 : vector<16x128xf32>
      %34 = arith.addf %32, %33 : vector<16x128xf32>
      %cst_11 = arith.constant 1.000000e+00 : f32
      %35 = vector.broadcast %cst_11 : f32 to vector<16x128xf32>
      %36 = arith.addf %35, %28 : vector<16x128xf32>
      %37 = tpu.reciprocal %36 {approx = true} : vector<16x128xf32> -> vector<16x128xf32>
      %cst_12 = arith.constant 0.000000e+00 : f32
      %38 = vector.broadcast %cst_12 : f32 to vector<16x128xf32>
      %39 = arith.cmpf oge, %24, %38 : vector<16x128xf32>
      %cst_13 = arith.constant 1.000000e+00 : f32
      %40 = vector.broadcast %cst_13 : f32 to vector<16x128xf32>
      %41 = arith.subf %40, %37 : vector<16x128xf32>
      %42 = arith.select %39, %37, %41 : vector<16x128xi1>, vector<16x128xf32>
      %43 = vector.shape_cast %34 : vector<16x128xf32> to vector<2x8x128xf32>
      %cst_14 = arith.constant dense<0.000000e+00> : vector<8x128xf32>
      %44 = vector.multi_reduction <add>, %43, %cst_14 [0] : vector<2x8x128xf32> to vector<8x128xf32>
      %45 = arith.addf %15, %44 : vector<8x128xf32>
      %46 = arith.mulf %42, %19 : vector<16x128xf32>
      %47 = vector.shape_cast %46 : vector<16x128xf32> to vector<2x8x128xf32>
      %cst_15 = arith.constant dense<0.000000e+00> : vector<8x128xf32>
      %48 = vector.multi_reduction <add>, %47, %cst_15 [0] : vector<2x8x128xf32> to vector<8x128xf32>
      %49 = arith.addf %15, %48 : vector<8x128xf32>
      %50 = vector.shape_cast %42 : vector<16x128xf32> to vector<2x8x128xf32>
      %cst_16 = arith.constant dense<0.000000e+00> : vector<8x128xf32>
      %51 = vector.multi_reduction <add>, %50, %cst_16 [0] : vector<2x8x128xf32> to vector<8x128xf32>
      %52 = arith.addf %15, %51 : vector<8x128xf32>
      %53 = arith.index_cast %17 : i32 to index
      %c0_17 = arith.constant 0 : index
      %54 = vector.load %arg4[%53, %c0_17] : memref<16x128xf32, #tpu.memory_space<vmem>>, vector<16x128xf32>
      %55 = math.absf %54 : vector<16x128xf32>
      %cst_18 = arith.constant 0.000000e+00 : f32
      %56 = vector.broadcast %cst_18 : f32 to vector<16x128xf32>
      %57 = arith.subf %56, %55 : vector<16x128xf32>
      %58 = math.exp %57 : vector<16x128xf32>
      %cst_19 = arith.constant 0.000000e+00 : f32
      %59 = vector.broadcast %cst_19 : f32 to vector<16x128xf32>
      %60 = arith.maximumf %54, %59 : vector<16x128xf32>
      %61 = arith.mulf %54, %19 : vector<16x128xf32>
      %62 = arith.subf %60, %61 : vector<16x128xf32>
      %63 = math.log1p %58 : vector<16x128xf32>
      %64 = arith.addf %62, %63 : vector<16x128xf32>
      %cst_20 = arith.constant 1.000000e+00 : f32
      %65 = vector.broadcast %cst_20 : f32 to vector<16x128xf32>
      %66 = arith.addf %65, %58 : vector<16x128xf32>
      %67 = tpu.reciprocal %66 {approx = true} : vector<16x128xf32> -> vector<16x128xf32>
      %cst_21 = arith.constant 0.000000e+00 : f32
      %68 = vector.broadcast %cst_21 : f32 to vector<16x128xf32>
      %69 = arith.cmpf oge, %54, %68 : vector<16x128xf32>
      %cst_22 = arith.constant 1.000000e+00 : f32
      %70 = vector.broadcast %cst_22 : f32 to vector<16x128xf32>
      %71 = arith.subf %70, %67 : vector<16x128xf32>
      %72 = arith.select %69, %67, %71 : vector<16x128xi1>, vector<16x128xf32>
      %73 = vector.shape_cast %64 : vector<16x128xf32> to vector<2x8x128xf32>
      %cst_23 = arith.constant dense<0.000000e+00> : vector<8x128xf32>
      %74 = vector.multi_reduction <add>, %73, %cst_23 [0] : vector<2x8x128xf32> to vector<8x128xf32>
      %75 = arith.addf %15, %74 : vector<8x128xf32>
      %76 = arith.mulf %72, %19 : vector<16x128xf32>
      %77 = vector.shape_cast %76 : vector<16x128xf32> to vector<2x8x128xf32>
      %cst_24 = arith.constant dense<0.000000e+00> : vector<8x128xf32>
      %78 = vector.multi_reduction <add>, %77, %cst_24 [0] : vector<2x8x128xf32> to vector<8x128xf32>
      %79 = arith.addf %15, %78 : vector<8x128xf32>
      %80 = vector.shape_cast %72 : vector<16x128xf32> to vector<2x8x128xf32>
      %cst_25 = arith.constant dense<0.000000e+00> : vector<8x128xf32>
      %81 = vector.multi_reduction <add>, %80, %cst_25 [0] : vector<2x8x128xf32> to vector<8x128xf32>
      %82 = arith.addf %15, %81 : vector<8x128xf32>
      %83 = arith.index_cast %17 : i32 to index
      %c0_26 = arith.constant 0 : index
      %84 = vector.load %arg5[%83, %c0_26] : memref<16x128xf32, #tpu.memory_space<vmem>>, vector<16x128xf32>
      %85 = math.absf %84 : vector<16x128xf32>
      %cst_27 = arith.constant 0.000000e+00 : f32
      %86 = vector.broadcast %cst_27 : f32 to vector<16x128xf32>
      %87 = arith.subf %86, %85 : vector<16x128xf32>
      %88 = math.exp %87 : vector<16x128xf32>
      %cst_28 = arith.constant 0.000000e+00 : f32
      %89 = vector.broadcast %cst_28 : f32 to vector<16x128xf32>
      %90 = arith.maximumf %84, %89 : vector<16x128xf32>
      %91 = arith.mulf %84, %19 : vector<16x128xf32>
      %92 = arith.subf %90, %91 : vector<16x128xf32>
      %93 = math.log1p %88 : vector<16x128xf32>
      %94 = arith.addf %92, %93 : vector<16x128xf32>
      %cst_29 = arith.constant 1.000000e+00 : f32
      %95 = vector.broadcast %cst_29 : f32 to vector<16x128xf32>
      %96 = arith.addf %95, %88 : vector<16x128xf32>
      %97 = tpu.reciprocal %96 {approx = true} : vector<16x128xf32> -> vector<16x128xf32>
      %cst_30 = arith.constant 0.000000e+00 : f32
      %98 = vector.broadcast %cst_30 : f32 to vector<16x128xf32>
      %99 = arith.cmpf oge, %84, %98 : vector<16x128xf32>
      %cst_31 = arith.constant 1.000000e+00 : f32
      %100 = vector.broadcast %cst_31 : f32 to vector<16x128xf32>
      %101 = arith.subf %100, %97 : vector<16x128xf32>
      %102 = arith.select %99, %97, %101 : vector<16x128xi1>, vector<16x128xf32>
      %103 = vector.shape_cast %94 : vector<16x128xf32> to vector<2x8x128xf32>
      %cst_32 = arith.constant dense<0.000000e+00> : vector<8x128xf32>
      %104 = vector.multi_reduction <add>, %103, %cst_32 [0] : vector<2x8x128xf32> to vector<8x128xf32>
      %105 = arith.addf %15, %104 : vector<8x128xf32>
      %106 = arith.mulf %102, %19 : vector<16x128xf32>
      %107 = vector.shape_cast %106 : vector<16x128xf32> to vector<2x8x128xf32>
      %cst_33 = arith.constant dense<0.000000e+00> : vector<8x128xf32>
      %108 = vector.multi_reduction <add>, %107, %cst_33 [0] : vector<2x8x128xf32> to vector<8x128xf32>
      %109 = arith.addf %15, %108 : vector<8x128xf32>
      %110 = vector.shape_cast %102 : vector<16x128xf32> to vector<2x8x128xf32>
      %cst_34 = arith.constant dense<0.000000e+00> : vector<8x128xf32>
      %111 = vector.multi_reduction <add>, %110, %cst_34 [0] : vector<2x8x128xf32> to vector<8x128xf32>
      %112 = arith.addf %15, %111 : vector<8x128xf32>
      %113 = arith.index_cast %17 : i32 to index
      %c0_35 = arith.constant 0 : index
      %114 = vector.load %arg6[%113, %c0_35] : memref<16x128xf32, #tpu.memory_space<vmem>>, vector<16x128xf32>
      %115 = math.absf %114 : vector<16x128xf32>
      %cst_36 = arith.constant 0.000000e+00 : f32
      %116 = vector.broadcast %cst_36 : f32 to vector<16x128xf32>
      %117 = arith.subf %116, %115 : vector<16x128xf32>
      %118 = math.exp %117 : vector<16x128xf32>
      %cst_37 = arith.constant 0.000000e+00 : f32
      %119 = vector.broadcast %cst_37 : f32 to vector<16x128xf32>
      %120 = arith.maximumf %114, %119 : vector<16x128xf32>
      %121 = arith.mulf %114, %19 : vector<16x128xf32>
      %122 = arith.subf %120, %121 : vector<16x128xf32>
      %123 = math.log1p %118 : vector<16x128xf32>
      %124 = arith.addf %122, %123 : vector<16x128xf32>
      %cst_38 = arith.constant 1.000000e+00 : f32
      %125 = vector.broadcast %cst_38 : f32 to vector<16x128xf32>
      %126 = arith.addf %125, %118 : vector<16x128xf32>
      %127 = tpu.reciprocal %126 {approx = true} : vector<16x128xf32> -> vector<16x128xf32>
      %cst_39 = arith.constant 0.000000e+00 : f32
      %128 = vector.broadcast %cst_39 : f32 to vector<16x128xf32>
      %129 = arith.cmpf oge, %114, %128 : vector<16x128xf32>
      %cst_40 = arith.constant 1.000000e+00 : f32
      %130 = vector.broadcast %cst_40 : f32 to vector<16x128xf32>
      %131 = arith.subf %130, %127 : vector<16x128xf32>
      %132 = arith.select %129, %127, %131 : vector<16x128xi1>, vector<16x128xf32>
      %133 = vector.shape_cast %124 : vector<16x128xf32> to vector<2x8x128xf32>
      %cst_41 = arith.constant dense<0.000000e+00> : vector<8x128xf32>
      %134 = vector.multi_reduction <add>, %133, %cst_41 [0] : vector<2x8x128xf32> to vector<8x128xf32>
      %135 = arith.addf %15, %134 : vector<8x128xf32>
      %136 = arith.mulf %132, %19 : vector<16x128xf32>
      %137 = vector.shape_cast %136 : vector<16x128xf32> to vector<2x8x128xf32>
      %cst_42 = arith.constant dense<0.000000e+00> : vector<8x128xf32>
      %138 = vector.multi_reduction <add>, %137, %cst_42 [0] : vector<2x8x128xf32> to vector<8x128xf32>
      %139 = arith.addf %15, %138 : vector<8x128xf32>
      %140 = vector.shape_cast %132 : vector<16x128xf32> to vector<2x8x128xf32>
      %cst_43 = arith.constant dense<0.000000e+00> : vector<8x128xf32>
      %141 = vector.multi_reduction <add>, %140, %cst_43 [0] : vector<2x8x128xf32> to vector<8x128xf32>
      %142 = arith.addf %15, %141 : vector<8x128xf32>
      %c1_i32_44 = arith.constant 1 : i32
      %c0_45 = arith.constant 0 : index
      %c3 = arith.constant 3 : index
      %c0_46 = arith.constant 0 : index
      %c0_47 = arith.constant 0 : index
      %143 = vector.load %arg8[%c0_45, %c3, %c0_46, %c0_47] : memref<4x4x8x128xf32, #tpu.memory_space<vmem>>, vector<1x1x8x128xf32>
      %144 = vector.shape_cast %143 : vector<1x1x8x128xf32> to vector<8x128xf32>
      %145 = arith.addf %144, %22 : vector<8x128xf32>
      %c0_48 = arith.constant 0 : index
      %c3_49 = arith.constant 3 : index
      %c0_50 = arith.constant 0 : index
      %c0_51 = arith.constant 0 : index
      %146 = vector.load %arg8[%c0_48, %c3_49, %c0_50, %c0_51] : memref<4x4x8x128xf32, #tpu.memory_space<vmem>>, vector<1x1x8x128xf32>
      %147 = vector.shape_cast %146 : vector<1x1x8x128xf32> to vector<8x128xf32>
      %148 = vector.shape_cast %145 : vector<8x128xf32> to vector<1x1x8x128xf32>
      tpu.vector_store %arg8[%c0_48, %c3_49, %c0_50, %c0_51], %148 {strides = array<i32>} : memref<4x4x8x128xf32, #tpu.memory_space<vmem>>, vector<1x1x8x128xf32>,
      %c0_52 = arith.constant 0 : index
      %c0_53 = arith.constant 0 : index
      %c0_54 = arith.constant 0 : index
      %c0_55 = arith.constant 0 : index
      %149 = vector.load %arg8[%c0_52, %c0_53, %c0_54, %c0_55] : memref<4x4x8x128xf32, #tpu.memory_space<vmem>>, vector<1x1x8x128xf32>
      %150 = vector.shape_cast %149 : vector<1x1x8x128xf32> to vector<8x128xf32>
      %151 = arith.addf %150, %45 : vector<8x128xf32>
      %c0_56 = arith.constant 0 : index
      %c0_57 = arith.constant 0 : index
      %c0_58 = arith.constant 0 : index
      %c0_59 = arith.constant 0 : index
      %152 = vector.load %arg8[%c0_56, %c0_57, %c0_58, %c0_59] : memref<4x4x8x128xf32, #tpu.memory_space<vmem>>, vector<1x1x8x128xf32>
      %153 = vector.shape_cast %152 : vector<1x1x8x128xf32> to vector<8x128xf32>
      %154 = vector.shape_cast %151 : vector<8x128xf32> to vector<1x1x8x128xf32>
      tpu.vector_store %arg8[%c0_56, %c0_57, %c0_58, %c0_59], %154 {strides = array<i32>} : memref<4x4x8x128xf32, #tpu.memory_space<vmem>>, vector<1x1x8x128xf32>,
      %c0_60 = arith.constant 0 : index
      %c1 = arith.constant 1 : index
      %c0_61 = arith.constant 0 : index
      %c0_62 = arith.constant 0 : index
      %155 = vector.load %arg8[%c0_60, %c1, %c0_61, %c0_62] : memref<4x4x8x128xf32, #tpu.memory_space<vmem>>, vector<1x1x8x128xf32>
      %156 = vector.shape_cast %155 : vector<1x1x8x128xf32> to vector<8x128xf32>
      %157 = arith.addf %156, %49 : vector<8x128xf32>
      %c0_63 = arith.constant 0 : index
      %c1_64 = arith.constant 1 : index
      %c0_65 = arith.constant 0 : index
      %c0_66 = arith.constant 0 : index
      %158 = vector.load %arg8[%c0_63, %c1_64, %c0_65, %c0_66] : memref<4x4x8x128xf32, #tpu.memory_space<vmem>>, vector<1x1x8x128xf32>
      %159 = vector.shape_cast %158 : vector<1x1x8x128xf32> to vector<8x128xf32>
      %160 = vector.shape_cast %157 : vector<8x128xf32> to vector<1x1x8x128xf32>
      tpu.vector_store %arg8[%c0_63, %c1_64, %c0_65, %c0_66], %160 {strides = array<i32>} : memref<4x4x8x128xf32, #tpu.memory_space<vmem>>, vector<1x1x8x128xf32>,
      %c0_67 = arith.constant 0 : index
      %c2 = arith.constant 2 : index
      %c0_68 = arith.constant 0 : index
      %c0_69 = arith.constant 0 : index
      %161 = vector.load %arg8[%c0_67, %c2, %c0_68, %c0_69] : memref<4x4x8x128xf32, #tpu.memory_space<vmem>>, vector<1x1x8x128xf32>
      %162 = vector.shape_cast %161 : vector<1x1x8x128xf32> to vector<8x128xf32>
      %163 = arith.addf %162, %52 : vector<8x128xf32>
      %c0_70 = arith.constant 0 : index
      %c2_71 = arith.constant 2 : index
      %c0_72 = arith.constant 0 : index
      %c0_73 = arith.constant 0 : index
      %164 = vector.load %arg8[%c0_70, %c2_71, %c0_72, %c0_73] : memref<4x4x8x128xf32, #tpu.memory_space<vmem>>, vector<1x1x8x128xf32>
      %165 = vector.shape_cast %164 : vector<1x1x8x128xf32> to vector<8x128xf32>
      %166 = vector.shape_cast %163 : vector<8x128xf32> to vector<1x1x8x128xf32>
      tpu.vector_store %arg8[%c0_70, %c2_71, %c0_72, %c0_73], %166 {strides = array<i32>} : memref<4x4x8x128xf32, #tpu.memory_space<vmem>>, vector<1x1x8x128xf32>,
      %c1_74 = arith.constant 1 : index
      %c0_75 = arith.constant 0 : index
      %c0_76 = arith.constant 0 : index
      %c0_77 = arith.constant 0 : index
      %167 = vector.load %arg8[%c1_74, %c0_75, %c0_76, %c0_77] : memref<4x4x8x128xf32, #tpu.memory_space<vmem>>, vector<1x1x8x128xf32>
      %168 = vector.shape_cast %167 : vector<1x1x8x128xf32> to vector<8x128xf32>
      %169 = arith.addf %168, %75 : vector<8x128xf32>
      %c1_78 = arith.constant 1 : index
      %c0_79 = arith.constant 0 : index
      %c0_80 = arith.constant 0 : index
      %c0_81 = arith.constant 0 : index
      %170 = vector.load %arg8[%c1_78, %c0_79, %c0_80, %c0_81] : memref<4x4x8x128xf32, #tpu.memory_space<vmem>>, vector<1x1x8x128xf32>
      %171 = vector.shape_cast %170 : vector<1x1x8x128xf32> to vector<8x128xf32>
      %172 = vector.shape_cast %169 : vector<8x128xf32> to vector<1x1x8x128xf32>
      tpu.vector_store %arg8[%c1_78, %c0_79, %c0_80, %c0_81], %172 {strides = array<i32>} : memref<4x4x8x128xf32, #tpu.memory_space<vmem>>, vector<1x1x8x128xf32>,
      %c1_82 = arith.constant 1 : index
      %c1_83 = arith.constant 1 : index
      %c0_84 = arith.constant 0 : index
      %c0_85 = arith.constant 0 : index
      %173 = vector.load %arg8[%c1_82, %c1_83, %c0_84, %c0_85] : memref<4x4x8x128xf32, #tpu.memory_space<vmem>>, vector<1x1x8x128xf32>
      %174 = vector.shape_cast %173 : vector<1x1x8x128xf32> to vector<8x128xf32>
      %175 = arith.addf %174, %79 : vector<8x128xf32>
      %c1_86 = arith.constant 1 : index
      %c1_87 = arith.constant 1 : index
      %c0_88 = arith.constant 0 : index
      %c0_89 = arith.constant 0 : index
      %176 = vector.load %arg8[%c1_86, %c1_87, %c0_88, %c0_89] : memref<4x4x8x128xf32, #tpu.memory_space<vmem>>, vector<1x1x8x128xf32>
      %177 = vector.shape_cast %176 : vector<1x1x8x128xf32> to vector<8x128xf32>
      %178 = vector.shape_cast %175 : vector<8x128xf32> to vector<1x1x8x128xf32>
      tpu.vector_store %arg8[%c1_86, %c1_87, %c0_88, %c0_89], %178 {strides = array<i32>} : memref<4x4x8x128xf32, #tpu.memory_space<vmem>>, vector<1x1x8x128xf32>,
      %c1_90 = arith.constant 1 : index
      %c2_91 = arith.constant 2 : index
      %c0_92 = arith.constant 0 : index
      %c0_93 = arith.constant 0 : index
      %179 = vector.load %arg8[%c1_90, %c2_91, %c0_92, %c0_93] : memref<4x4x8x128xf32, #tpu.memory_space<vmem>>, vector<1x1x8x128xf32>
      %180 = vector.shape_cast %179 : vector<1x1x8x128xf32> to vector<8x128xf32>
      %181 = arith.addf %180, %82 : vector<8x128xf32>
      %c1_94 = arith.constant 1 : index
      %c2_95 = arith.constant 2 : index
      %c0_96 = arith.constant 0 : index
      %c0_97 = arith.constant 0 : index
      %182 = vector.load %arg8[%c1_94, %c2_95, %c0_96, %c0_97] : memref<4x4x8x128xf32, #tpu.memory_space<vmem>>, vector<1x1x8x128xf32>
      %183 = vector.shape_cast %182 : vector<1x1x8x128xf32> to vector<8x128xf32>
      %184 = vector.shape_cast %181 : vector<8x128xf32> to vector<1x1x8x128xf32>
      tpu.vector_store %arg8[%c1_94, %c2_95, %c0_96, %c0_97], %184 {strides = array<i32>} : memref<4x4x8x128xf32, #tpu.memory_space<vmem>>, vector<1x1x8x128xf32>,
      %c2_98 = arith.constant 2 : index
      %c0_99 = arith.constant 0 : index
      %c0_100 = arith.constant 0 : index
      %c0_101 = arith.constant 0 : index
      %185 = vector.load %arg8[%c2_98, %c0_99, %c0_100, %c0_101] : memref<4x4x8x128xf32, #tpu.memory_space<vmem>>, vector<1x1x8x128xf32>
      %186 = vector.shape_cast %185 : vector<1x1x8x128xf32> to vector<8x128xf32>
      %187 = arith.addf %186, %105 : vector<8x128xf32>
      %c2_102 = arith.constant 2 : index
      %c0_103 = arith.constant 0 : index
      %c0_104 = arith.constant 0 : index
      %c0_105 = arith.constant 0 : index
      %188 = vector.load %arg8[%c2_102, %c0_103, %c0_104, %c0_105] : memref<4x4x8x128xf32, #tpu.memory_space<vmem>>, vector<1x1x8x128xf32>
      %189 = vector.shape_cast %188 : vector<1x1x8x128xf32> to vector<8x128xf32>
      %190 = vector.shape_cast %187 : vector<8x128xf32> to vector<1x1x8x128xf32>
      tpu.vector_store %arg8[%c2_102, %c0_103, %c0_104, %c0_105], %190 {strides = array<i32>} : memref<4x4x8x128xf32, #tpu.memory_space<vmem>>, vector<1x1x8x128xf32>,
      %c2_106 = arith.constant 2 : index
      %c1_107 = arith.constant 1 : index
      %c0_108 = arith.constant 0 : index
      %c0_109 = arith.constant 0 : index
      %191 = vector.load %arg8[%c2_106, %c1_107, %c0_108, %c0_109] : memref<4x4x8x128xf32, #tpu.memory_space<vmem>>, vector<1x1x8x128xf32>
      %192 = vector.shape_cast %191 : vector<1x1x8x128xf32> to vector<8x128xf32>
      %193 = arith.addf %192, %109 : vector<8x128xf32>
      %c2_110 = arith.constant 2 : index
      %c1_111 = arith.constant 1 : index
      %c0_112 = arith.constant 0 : index
      %c0_113 = arith.constant 0 : index
      %194 = vector.load %arg8[%c2_110, %c1_111, %c0_112, %c0_113] : memref<4x4x8x128xf32, #tpu.memory_space<vmem>>, vector<1x1x8x128xf32>
      %195 = vector.shape_cast %194 : vector<1x1x8x128xf32> to vector<8x128xf32>
      %196 = vector.shape_cast %193 : vector<8x128xf32> to vector<1x1x8x128xf32>
      tpu.vector_store %arg8[%c2_110, %c1_111, %c0_112, %c0_113], %196 {strides = array<i32>} : memref<4x4x8x128xf32, #tpu.memory_space<vmem>>, vector<1x1x8x128xf32>,
      %c2_114 = arith.constant 2 : index
      %c2_115 = arith.constant 2 : index
      %c0_116 = arith.constant 0 : index
      %c0_117 = arith.constant 0 : index
      %197 = vector.load %arg8[%c2_114, %c2_115, %c0_116, %c0_117] : memref<4x4x8x128xf32, #tpu.memory_space<vmem>>, vector<1x1x8x128xf32>
      %198 = vector.shape_cast %197 : vector<1x1x8x128xf32> to vector<8x128xf32>
      %199 = arith.addf %198, %112 : vector<8x128xf32>
      %c2_118 = arith.constant 2 : index
      %c2_119 = arith.constant 2 : index
      %c0_120 = arith.constant 0 : index
      %c0_121 = arith.constant 0 : index
      %200 = vector.load %arg8[%c2_118, %c2_119, %c0_120, %c0_121] : memref<4x4x8x128xf32, #tpu.memory_space<vmem>>, vector<1x1x8x128xf32>
      %201 = vector.shape_cast %200 : vector<1x1x8x128xf32> to vector<8x128xf32>
      %202 = vector.shape_cast %199 : vector<8x128xf32> to vector<1x1x8x128xf32>
      tpu.vector_store %arg8[%c2_118, %c2_119, %c0_120, %c0_121], %202 {strides = array<i32>} : memref<4x4x8x128xf32, #tpu.memory_space<vmem>>, vector<1x1x8x128xf32>,
      %c3_122 = arith.constant 3 : index
      %c0_123 = arith.constant 0 : index
      %c0_124 = arith.constant 0 : index
      %c0_125 = arith.constant 0 : index
      %203 = vector.load %arg8[%c3_122, %c0_123, %c0_124, %c0_125] : memref<4x4x8x128xf32, #tpu.memory_space<vmem>>, vector<1x1x8x128xf32>
      %204 = vector.shape_cast %203 : vector<1x1x8x128xf32> to vector<8x128xf32>
      %205 = arith.addf %204, %135 : vector<8x128xf32>
      %c3_126 = arith.constant 3 : index
      %c0_127 = arith.constant 0 : index
      %c0_128 = arith.constant 0 : index
      %c0_129 = arith.constant 0 : index
      %206 = vector.load %arg8[%c3_126, %c0_127, %c0_128, %c0_129] : memref<4x4x8x128xf32, #tpu.memory_space<vmem>>, vector<1x1x8x128xf32>
      %207 = vector.shape_cast %206 : vector<1x1x8x128xf32> to vector<8x128xf32>
      %208 = vector.shape_cast %205 : vector<8x128xf32> to vector<1x1x8x128xf32>
      tpu.vector_store %arg8[%c3_126, %c0_127, %c0_128, %c0_129], %208 {strides = array<i32>} : memref<4x4x8x128xf32, #tpu.memory_space<vmem>>, vector<1x1x8x128xf32>,
      %c3_130 = arith.constant 3 : index
      %c1_131 = arith.constant 1 : index
      %c0_132 = arith.constant 0 : index
      %c0_133 = arith.constant 0 : index
      %209 = vector.load %arg8[%c3_130, %c1_131, %c0_132, %c0_133] : memref<4x4x8x128xf32, #tpu.memory_space<vmem>>, vector<1x1x8x128xf32>
      %210 = vector.shape_cast %209 : vector<1x1x8x128xf32> to vector<8x128xf32>
      %211 = arith.addf %210, %139 : vector<8x128xf32>
      %c3_134 = arith.constant 3 : index
      %c1_135 = arith.constant 1 : index
      %c0_136 = arith.constant 0 : index
      %c0_137 = arith.constant 0 : index
      %212 = vector.load %arg8[%c3_134, %c1_135, %c0_136, %c0_137] : memref<4x4x8x128xf32, #tpu.memory_space<vmem>>, vector<1x1x8x128xf32>
      %213 = vector.shape_cast %212 : vector<1x1x8x128xf32> to vector<8x128xf32>
      %214 = vector.shape_cast %211 : vector<8x128xf32> to vector<1x1x8x128xf32>
      tpu.vector_store %arg8[%c3_134, %c1_135, %c0_136, %c0_137], %214 {strides = array<i32>} : memref<4x4x8x128xf32, #tpu.memory_space<vmem>>, vector<1x1x8x128xf32>,
      %c3_138 = arith.constant 3 : index
      %c2_139 = arith.constant 2 : index
      %c0_140 = arith.constant 0 : index
      %c0_141 = arith.constant 0 : index
      %215 = vector.load %arg8[%c3_138, %c2_139, %c0_140, %c0_141] : memref<4x4x8x128xf32, #tpu.memory_space<vmem>>, vector<1x1x8x128xf32>
      %216 = vector.shape_cast %215 : vector<1x1x8x128xf32> to vector<8x128xf32>
      %217 = arith.addf %216, %142 : vector<8x128xf32>
      %c3_142 = arith.constant 3 : index
      %c2_143 = arith.constant 2 : index
      %c0_144 = arith.constant 0 : index
      %c0_145 = arith.constant 0 : index
      %218 = vector.load %arg8[%c3_142, %c2_143, %c0_144, %c0_145] : memref<4x4x8x128xf32, #tpu.memory_space<vmem>>, vector<1x1x8x128xf32>
      %219 = vector.shape_cast %218 : vector<1x1x8x128xf32> to vector<8x128xf32>
      %220 = vector.shape_cast %217 : vector<8x128xf32> to vector<1x1x8x128xf32>
      tpu.vector_store %arg8[%c3_142, %c2_143, %c0_144, %c0_145], %220 {strides = array<i32>} : memref<4x4x8x128xf32, #tpu.memory_space<vmem>>, vector<1x1x8x128xf32>,
    } else {
    }
    %true = arith.constant true
    %12 = arith.xori %9, %true : i1
    %13 = arith.extui %12 : i1 to i32
    %c0_i32_3 = arith.constant 0 : i32
    %14 = arith.cmpi ne, %13, %c0_i32_3 : i32
    scf.if %14 {
      %cst = arith.constant 0.000000e+00 : f32
      %15 = vector.broadcast %cst : f32 to vector<8x128xf32>
      %c0_i32_4 = arith.constant 0 : i32
      %c16_i32_5 = arith.constant 16 : i32
      %16 = arith.muli %c0_i32_4, %c16_i32_5 : i32
      %17 = tpu.assume_multiple %16, 16 : i32
      %18 = arith.index_cast %17 : i32 to index
      %c0_6 = arith.constant 0 : index
      %19 = vector.load %arg7[%18, %c0_6] : memref<16x128xf32, #tpu.memory_space<vmem>>, vector<16x128xf32>
      %20 = arith.addi %6, %17 : i32
      %21 = tpu.iota {dimensions = array<i32: 0>} : vector<16x128xi32>
      %22 = vector.broadcast %20 : i32 to vector<16x128xi32>
      %23 = arith.addi %22, %21 : vector<16x128xi32>
      %c128_i32_7 = arith.constant 128 : i32
      %24 = vector.broadcast %c128_i32_7 : i32 to vector<16x128xi32>
      %25 = arith.muli %23, %24 : vector<16x128xi32>
      %26 = tpu.iota {dimensions = array<i32: 1>} : vector<16x128xi32>
      %27 = arith.addi %25, %26 : vector<16x128xi32>
      %28 = vector.broadcast %3 : i32 to vector<16x128xi32>
      %29 = arith.cmpi slt, %27, %28 : vector<16x128xi32>
      %cst_8 = arith.constant 0.000000e+00 : f32
      %30 = vector.broadcast %cst_8 : f32 to vector<16x128xf32>
      %31 = arith.select %29, %19, %30 : vector<16x128xi1>, vector<16x128xf32>
      %32 = vector.shape_cast %31 : vector<16x128xf32> to vector<2x8x128xf32>
      %cst_9 = arith.constant dense<0.000000e+00> : vector<8x128xf32>
      %33 = vector.multi_reduction <add>, %32, %cst_9 [0] : vector<2x8x128xf32> to vector<8x128xf32>
      %34 = arith.addf %15, %33 : vector<8x128xf32>
      %35 = arith.index_cast %17 : i32 to index
      %c0_10 = arith.constant 0 : index
      %36 = vector.load %arg3[%35, %c0_10] : memref<16x128xf32, #tpu.memory_space<vmem>>, vector<16x128xf32>
      %cst_11 = arith.constant -1.000000e+09 : f32
      %37 = vector.broadcast %cst_11 : f32 to vector<16x128xf32>
      %38 = arith.select %29, %36, %37 : vector<16x128xi1>, vector<16x128xf32>
      %39 = math.absf %38 : vector<16x128xf32>
      %cst_12 = arith.constant 0.000000e+00 : f32
      %40 = vector.broadcast %cst_12 : f32 to vector<16x128xf32>
      %41 = arith.subf %40, %39 : vector<16x128xf32>
      %42 = math.exp %41 : vector<16x128xf32>
      %cst_13 = arith.constant 0.000000e+00 : f32
      %43 = vector.broadcast %cst_13 : f32 to vector<16x128xf32>
      %44 = arith.maximumf %38, %43 : vector<16x128xf32>
      %45 = arith.mulf %38, %31 : vector<16x128xf32>
      %46 = arith.subf %44, %45 : vector<16x128xf32>
      %47 = math.log1p %42 : vector<16x128xf32>
      %48 = arith.addf %46, %47 : vector<16x128xf32>
      %cst_14 = arith.constant 1.000000e+00 : f32
      %49 = vector.broadcast %cst_14 : f32 to vector<16x128xf32>
      %50 = arith.addf %49, %42 : vector<16x128xf32>
      %51 = tpu.reciprocal %50 {approx = true} : vector<16x128xf32> -> vector<16x128xf32>
      %cst_15 = arith.constant 0.000000e+00 : f32
      %52 = vector.broadcast %cst_15 : f32 to vector<16x128xf32>
      %53 = arith.cmpf oge, %38, %52 : vector<16x128xf32>
      %cst_16 = arith.constant 1.000000e+00 : f32
      %54 = vector.broadcast %cst_16 : f32 to vector<16x128xf32>
      %55 = arith.subf %54, %51 : vector<16x128xf32>
      %56 = arith.select %53, %51, %55 : vector<16x128xi1>, vector<16x128xf32>
      %cst_17 = arith.constant 0.000000e+00 : f32
      %57 = vector.broadcast %cst_17 : f32 to vector<16x128xf32>
      %58 = arith.select %29, %56, %57 : vector<16x128xi1>, vector<16x128xf32>
      %59 = vector.shape_cast %48 : vector<16x128xf32> to vector<2x8x128xf32>
      %cst_18 = arith.constant dense<0.000000e+00> : vector<8x128xf32>
      %60 = vector.multi_reduction <add>, %59, %cst_18 [0] : vector<2x8x128xf32> to vector<8x128xf32>
      %61 = arith.addf %15, %60 : vector<8x128xf32>
      %62 = arith.mulf %58, %31 : vector<16x128xf32>
      %63 = vector.shape_cast %62 : vector<16x128xf32> to vector<2x8x128xf32>
      %cst_19 = arith.constant dense<0.000000e+00> : vector<8x128xf32>
      %64 = vector.multi_reduction <add>, %63, %cst_19 [0] : vector<2x8x128xf32> to vector<8x128xf32>
      %65 = arith.addf %15, %64 : vector<8x128xf32>
      %66 = vector.shape_cast %58 : vector<16x128xf32> to vector<2x8x128xf32>
      %cst_20 = arith.constant dense<0.000000e+00> : vector<8x128xf32>
      %67 = vector.multi_reduction <add>, %66, %cst_20 [0] : vector<2x8x128xf32> to vector<8x128xf32>
      %68 = arith.addf %15, %67 : vector<8x128xf32>
      %69 = arith.index_cast %17 : i32 to index
      %c0_21 = arith.constant 0 : index
      %70 = vector.load %arg4[%69, %c0_21] : memref<16x128xf32, #tpu.memory_space<vmem>>, vector<16x128xf32>
      %cst_22 = arith.constant -1.000000e+09 : f32
      %71 = vector.broadcast %cst_22 : f32 to vector<16x128xf32>
      %72 = arith.select %29, %70, %71 : vector<16x128xi1>, vector<16x128xf32>
      %73 = math.absf %72 : vector<16x128xf32>
      %cst_23 = arith.constant 0.000000e+00 : f32
      %74 = vector.broadcast %cst_23 : f32 to vector<16x128xf32>
      %75 = arith.subf %74, %73 : vector<16x128xf32>
      %76 = math.exp %75 : vector<16x128xf32>
      %cst_24 = arith.constant 0.000000e+00 : f32
      %77 = vector.broadcast %cst_24 : f32 to vector<16x128xf32>
      %78 = arith.maximumf %72, %77 : vector<16x128xf32>
      %79 = arith.mulf %72, %31 : vector<16x128xf32>
      %80 = arith.subf %78, %79 : vector<16x128xf32>
      %81 = math.log1p %76 : vector<16x128xf32>
      %82 = arith.addf %80, %81 : vector<16x128xf32>
      %cst_25 = arith.constant 1.000000e+00 : f32
      %83 = vector.broadcast %cst_25 : f32 to vector<16x128xf32>
      %84 = arith.addf %83, %76 : vector<16x128xf32>
      %85 = tpu.reciprocal %84 {approx = true} : vector<16x128xf32> -> vector<16x128xf32>
      %cst_26 = arith.constant 0.000000e+00 : f32
      %86 = vector.broadcast %cst_26 : f32 to vector<16x128xf32>
      %87 = arith.cmpf oge, %72, %86 : vector<16x128xf32>
      %cst_27 = arith.constant 1.000000e+00 : f32
      %88 = vector.broadcast %cst_27 : f32 to vector<16x128xf32>
      %89 = arith.subf %88, %85 : vector<16x128xf32>
      %90 = arith.select %87, %85, %89 : vector<16x128xi1>, vector<16x128xf32>
      %cst_28 = arith.constant 0.000000e+00 : f32
      %91 = vector.broadcast %cst_28 : f32 to vector<16x128xf32>
      %92 = arith.select %29, %90, %91 : vector<16x128xi1>, vector<16x128xf32>
      %93 = vector.shape_cast %82 : vector<16x128xf32> to vector<2x8x128xf32>
      %cst_29 = arith.constant dense<0.000000e+00> : vector<8x128xf32>
      %94 = vector.multi_reduction <add>, %93, %cst_29 [0] : vector<2x8x128xf32> to vector<8x128xf32>
      %95 = arith.addf %15, %94 : vector<8x128xf32>
      %96 = arith.mulf %92, %31 : vector<16x128xf32>
      %97 = vector.shape_cast %96 : vector<16x128xf32> to vector<2x8x128xf32>
      %cst_30 = arith.constant dense<0.000000e+00> : vector<8x128xf32>
      %98 = vector.multi_reduction <add>, %97, %cst_30 [0] : vector<2x8x128xf32> to vector<8x128xf32>
      %99 = arith.addf %15, %98 : vector<8x128xf32>
      %100 = vector.shape_cast %92 : vector<16x128xf32> to vector<2x8x128xf32>
      %cst_31 = arith.constant dense<0.000000e+00> : vector<8x128xf32>
      %101 = vector.multi_reduction <add>, %100, %cst_31 [0] : vector<2x8x128xf32> to vector<8x128xf32>
      %102 = arith.addf %15, %101 : vector<8x128xf32>
      %103 = arith.index_cast %17 : i32 to index
      %c0_32 = arith.constant 0 : index
      %104 = vector.load %arg5[%103, %c0_32] : memref<16x128xf32, #tpu.memory_space<vmem>>, vector<16x128xf32>
      %cst_33 = arith.constant -1.000000e+09 : f32
      %105 = vector.broadcast %cst_33 : f32 to vector<16x128xf32>
      %106 = arith.select %29, %104, %105 : vector<16x128xi1>, vector<16x128xf32>
      %107 = math.absf %106 : vector<16x128xf32>
      %cst_34 = arith.constant 0.000000e+00 : f32
      %108 = vector.broadcast %cst_34 : f32 to vector<16x128xf32>
      %109 = arith.subf %108, %107 : vector<16x128xf32>
      %110 = math.exp %109 : vector<16x128xf32>
      %cst_35 = arith.constant 0.000000e+00 : f32
      %111 = vector.broadcast %cst_35 : f32 to vector<16x128xf32>
      %112 = arith.maximumf %106, %111 : vector<16x128xf32>
      %113 = arith.mulf %106, %31 : vector<16x128xf32>
      %114 = arith.subf %112, %113 : vector<16x128xf32>
      %115 = math.log1p %110 : vector<16x128xf32>
      %116 = arith.addf %114, %115 : vector<16x128xf32>
      %cst_36 = arith.constant 1.000000e+00 : f32
      %117 = vector.broadcast %cst_36 : f32 to vector<16x128xf32>
      %118 = arith.addf %117, %110 : vector<16x128xf32>
      %119 = tpu.reciprocal %118 {approx = true} : vector<16x128xf32> -> vector<16x128xf32>
      %cst_37 = arith.constant 0.000000e+00 : f32
      %120 = vector.broadcast %cst_37 : f32 to vector<16x128xf32>
      %121 = arith.cmpf oge, %106, %120 : vector<16x128xf32>
      %cst_38 = arith.constant 1.000000e+00 : f32
      %122 = vector.broadcast %cst_38 : f32 to vector<16x128xf32>
      %123 = arith.subf %122, %119 : vector<16x128xf32>
      %124 = arith.select %121, %119, %123 : vector<16x128xi1>, vector<16x128xf32>
      %cst_39 = arith.constant 0.000000e+00 : f32
      %125 = vector.broadcast %cst_39 : f32 to vector<16x128xf32>
      %126 = arith.select %29, %124, %125 : vector<16x128xi1>, vector<16x128xf32>
      %127 = vector.shape_cast %116 : vector<16x128xf32> to vector<2x8x128xf32>
      %cst_40 = arith.constant dense<0.000000e+00> : vector<8x128xf32>
      %128 = vector.multi_reduction <add>, %127, %cst_40 [0] : vector<2x8x128xf32> to vector<8x128xf32>
      %129 = arith.addf %15, %128 : vector<8x128xf32>
      %130 = arith.mulf %126, %31 : vector<16x128xf32>
      %131 = vector.shape_cast %130 : vector<16x128xf32> to vector<2x8x128xf32>
      %cst_41 = arith.constant dense<0.000000e+00> : vector<8x128xf32>
      %132 = vector.multi_reduction <add>, %131, %cst_41 [0] : vector<2x8x128xf32> to vector<8x128xf32>
      %133 = arith.addf %15, %132 : vector<8x128xf32>
      %134 = vector.shape_cast %126 : vector<16x128xf32> to vector<2x8x128xf32>
      %cst_42 = arith.constant dense<0.000000e+00> : vector<8x128xf32>
      %135 = vector.multi_reduction <add>, %134, %cst_42 [0] : vector<2x8x128xf32> to vector<8x128xf32>
      %136 = arith.addf %15, %135 : vector<8x128xf32>
      %137 = arith.index_cast %17 : i32 to index
      %c0_43 = arith.constant 0 : index
      %138 = vector.load %arg6[%137, %c0_43] : memref<16x128xf32, #tpu.memory_space<vmem>>, vector<16x128xf32>
      %cst_44 = arith.constant -1.000000e+09 : f32
      %139 = vector.broadcast %cst_44 : f32 to vector<16x128xf32>
      %140 = arith.select %29, %138, %139 : vector<16x128xi1>, vector<16x128xf32>
      %141 = math.absf %140 : vector<16x128xf32>
      %cst_45 = arith.constant 0.000000e+00 : f32
      %142 = vector.broadcast %cst_45 : f32 to vector<16x128xf32>
      %143 = arith.subf %142, %141 : vector<16x128xf32>
      %144 = math.exp %143 : vector<16x128xf32>
      %cst_46 = arith.constant 0.000000e+00 : f32
      %145 = vector.broadcast %cst_46 : f32 to vector<16x128xf32>
      %146 = arith.maximumf %140, %145 : vector<16x128xf32>
      %147 = arith.mulf %140, %31 : vector<16x128xf32>
      %148 = arith.subf %146, %147 : vector<16x128xf32>
      %149 = math.log1p %144 : vector<16x128xf32>
      %150 = arith.addf %148, %149 : vector<16x128xf32>
      %cst_47 = arith.constant 1.000000e+00 : f32
      %151 = vector.broadcast %cst_47 : f32 to vector<16x128xf32>
      %152 = arith.addf %151, %144 : vector<16x128xf32>
      %153 = tpu.reciprocal %152 {approx = true} : vector<16x128xf32> -> vector<16x128xf32>
      %cst_48 = arith.constant 0.000000e+00 : f32
      %154 = vector.broadcast %cst_48 : f32 to vector<16x128xf32>
      %155 = arith.cmpf oge, %140, %154 : vector<16x128xf32>
      %cst_49 = arith.constant 1.000000e+00 : f32
      %156 = vector.broadcast %cst_49 : f32 to vector<16x128xf32>
      %157 = arith.subf %156, %153 : vector<16x128xf32>
      %158 = arith.select %155, %153, %157 : vector<16x128xi1>, vector<16x128xf32>
      %cst_50 = arith.constant 0.000000e+00 : f32
      %159 = vector.broadcast %cst_50 : f32 to vector<16x128xf32>
      %160 = arith.select %29, %158, %159 : vector<16x128xi1>, vector<16x128xf32>
      %161 = vector.shape_cast %150 : vector<16x128xf32> to vector<2x8x128xf32>
      %cst_51 = arith.constant dense<0.000000e+00> : vector<8x128xf32>
      %162 = vector.multi_reduction <add>, %161, %cst_51 [0] : vector<2x8x128xf32> to vector<8x128xf32>
      %163 = arith.addf %15, %162 : vector<8x128xf32>
      %164 = arith.mulf %160, %31 : vector<16x128xf32>
      %165 = vector.shape_cast %164 : vector<16x128xf32> to vector<2x8x128xf32>
      %cst_52 = arith.constant dense<0.000000e+00> : vector<8x128xf32>
      %166 = vector.multi_reduction <add>, %165, %cst_52 [0] : vector<2x8x128xf32> to vector<8x128xf32>
      %167 = arith.addf %15, %166 : vector<8x128xf32>
      %168 = vector.shape_cast %160 : vector<16x128xf32> to vector<2x8x128xf32>
      %cst_53 = arith.constant dense<0.000000e+00> : vector<8x128xf32>
      %169 = vector.multi_reduction <add>, %168, %cst_53 [0] : vector<2x8x128xf32> to vector<8x128xf32>
      %170 = arith.addf %15, %169 : vector<8x128xf32>
      %c1_i32_54 = arith.constant 1 : i32
      %c0_55 = arith.constant 0 : index
      %c3 = arith.constant 3 : index
      %c0_56 = arith.constant 0 : index
      %c0_57 = arith.constant 0 : index
      %171 = vector.load %arg8[%c0_55, %c3, %c0_56, %c0_57] : memref<4x4x8x128xf32, #tpu.memory_space<vmem>>, vector<1x1x8x128xf32>
      %172 = vector.shape_cast %171 : vector<1x1x8x128xf32> to vector<8x128xf32>
      %173 = arith.addf %172, %34 : vector<8x128xf32>
      %c0_58 = arith.constant 0 : index
      %c3_59 = arith.constant 3 : index
      %c0_60 = arith.constant 0 : index
      %c0_61 = arith.constant 0 : index
      %174 = vector.load %arg8[%c0_58, %c3_59, %c0_60, %c0_61] : memref<4x4x8x128xf32, #tpu.memory_space<vmem>>, vector<1x1x8x128xf32>
      %175 = vector.shape_cast %174 : vector<1x1x8x128xf32> to vector<8x128xf32>
      %176 = vector.shape_cast %173 : vector<8x128xf32> to vector<1x1x8x128xf32>
      tpu.vector_store %arg8[%c0_58, %c3_59, %c0_60, %c0_61], %176 {strides = array<i32>} : memref<4x4x8x128xf32, #tpu.memory_space<vmem>>, vector<1x1x8x128xf32>,
      %c0_62 = arith.constant 0 : index
      %c0_63 = arith.constant 0 : index
      %c0_64 = arith.constant 0 : index
      %c0_65 = arith.constant 0 : index
      %177 = vector.load %arg8[%c0_62, %c0_63, %c0_64, %c0_65] : memref<4x4x8x128xf32, #tpu.memory_space<vmem>>, vector<1x1x8x128xf32>
      %178 = vector.shape_cast %177 : vector<1x1x8x128xf32> to vector<8x128xf32>
      %179 = arith.addf %178, %61 : vector<8x128xf32>
      %c0_66 = arith.constant 0 : index
      %c0_67 = arith.constant 0 : index
      %c0_68 = arith.constant 0 : index
      %c0_69 = arith.constant 0 : index
      %180 = vector.load %arg8[%c0_66, %c0_67, %c0_68, %c0_69] : memref<4x4x8x128xf32, #tpu.memory_space<vmem>>, vector<1x1x8x128xf32>
      %181 = vector.shape_cast %180 : vector<1x1x8x128xf32> to vector<8x128xf32>
      %182 = vector.shape_cast %179 : vector<8x128xf32> to vector<1x1x8x128xf32>
      tpu.vector_store %arg8[%c0_66, %c0_67, %c0_68, %c0_69], %182 {strides = array<i32>} : memref<4x4x8x128xf32, #tpu.memory_space<vmem>>, vector<1x1x8x128xf32>,
      %c0_70 = arith.constant 0 : index
      %c1 = arith.constant 1 : index
      %c0_71 = arith.constant 0 : index
      %c0_72 = arith.constant 0 : index
      %183 = vector.load %arg8[%c0_70, %c1, %c0_71, %c0_72] : memref<4x4x8x128xf32, #tpu.memory_space<vmem>>, vector<1x1x8x128xf32>
      %184 = vector.shape_cast %183 : vector<1x1x8x128xf32> to vector<8x128xf32>
      %185 = arith.addf %184, %65 : vector<8x128xf32>
      %c0_73 = arith.constant 0 : index
      %c1_74 = arith.constant 1 : index
      %c0_75 = arith.constant 0 : index
      %c0_76 = arith.constant 0 : index
      %186 = vector.load %arg8[%c0_73, %c1_74, %c0_75, %c0_76] : memref<4x4x8x128xf32, #tpu.memory_space<vmem>>, vector<1x1x8x128xf32>
      %187 = vector.shape_cast %186 : vector<1x1x8x128xf32> to vector<8x128xf32>
      %188 = vector.shape_cast %185 : vector<8x128xf32> to vector<1x1x8x128xf32>
      tpu.vector_store %arg8[%c0_73, %c1_74, %c0_75, %c0_76], %188 {strides = array<i32>} : memref<4x4x8x128xf32, #tpu.memory_space<vmem>>, vector<1x1x8x128xf32>,
      %c0_77 = arith.constant 0 : index
      %c2 = arith.constant 2 : index
      %c0_78 = arith.constant 0 : index
      %c0_79 = arith.constant 0 : index
      %189 = vector.load %arg8[%c0_77, %c2, %c0_78, %c0_79] : memref<4x4x8x128xf32, #tpu.memory_space<vmem>>, vector<1x1x8x128xf32>
      %190 = vector.shape_cast %189 : vector<1x1x8x128xf32> to vector<8x128xf32>
      %191 = arith.addf %190, %68 : vector<8x128xf32>
      %c0_80 = arith.constant 0 : index
      %c2_81 = arith.constant 2 : index
      %c0_82 = arith.constant 0 : index
      %c0_83 = arith.constant 0 : index
      %192 = vector.load %arg8[%c0_80, %c2_81, %c0_82, %c0_83] : memref<4x4x8x128xf32, #tpu.memory_space<vmem>>, vector<1x1x8x128xf32>
      %193 = vector.shape_cast %192 : vector<1x1x8x128xf32> to vector<8x128xf32>
      %194 = vector.shape_cast %191 : vector<8x128xf32> to vector<1x1x8x128xf32>
      tpu.vector_store %arg8[%c0_80, %c2_81, %c0_82, %c0_83], %194 {strides = array<i32>} : memref<4x4x8x128xf32, #tpu.memory_space<vmem>>, vector<1x1x8x128xf32>,
      %c1_84 = arith.constant 1 : index
      %c0_85 = arith.constant 0 : index
      %c0_86 = arith.constant 0 : index
      %c0_87 = arith.constant 0 : index
      %195 = vector.load %arg8[%c1_84, %c0_85, %c0_86, %c0_87] : memref<4x4x8x128xf32, #tpu.memory_space<vmem>>, vector<1x1x8x128xf32>
      %196 = vector.shape_cast %195 : vector<1x1x8x128xf32> to vector<8x128xf32>
      %197 = arith.addf %196, %95 : vector<8x128xf32>
      %c1_88 = arith.constant 1 : index
      %c0_89 = arith.constant 0 : index
      %c0_90 = arith.constant 0 : index
      %c0_91 = arith.constant 0 : index
      %198 = vector.load %arg8[%c1_88, %c0_89, %c0_90, %c0_91] : memref<4x4x8x128xf32, #tpu.memory_space<vmem>>, vector<1x1x8x128xf32>
      %199 = vector.shape_cast %198 : vector<1x1x8x128xf32> to vector<8x128xf32>
      %200 = vector.shape_cast %197 : vector<8x128xf32> to vector<1x1x8x128xf32>
      tpu.vector_store %arg8[%c1_88, %c0_89, %c0_90, %c0_91], %200 {strides = array<i32>} : memref<4x4x8x128xf32, #tpu.memory_space<vmem>>, vector<1x1x8x128xf32>,
      %c1_92 = arith.constant 1 : index
      %c1_93 = arith.constant 1 : index
      %c0_94 = arith.constant 0 : index
      %c0_95 = arith.constant 0 : index
      %201 = vector.load %arg8[%c1_92, %c1_93, %c0_94, %c0_95] : memref<4x4x8x128xf32, #tpu.memory_space<vmem>>, vector<1x1x8x128xf32>
      %202 = vector.shape_cast %201 : vector<1x1x8x128xf32> to vector<8x128xf32>
      %203 = arith.addf %202, %99 : vector<8x128xf32>
      %c1_96 = arith.constant 1 : index
      %c1_97 = arith.constant 1 : index
      %c0_98 = arith.constant 0 : index
      %c0_99 = arith.constant 0 : index
      %204 = vector.load %arg8[%c1_96, %c1_97, %c0_98, %c0_99] : memref<4x4x8x128xf32, #tpu.memory_space<vmem>>, vector<1x1x8x128xf32>
      %205 = vector.shape_cast %204 : vector<1x1x8x128xf32> to vector<8x128xf32>
      %206 = vector.shape_cast %203 : vector<8x128xf32> to vector<1x1x8x128xf32>
      tpu.vector_store %arg8[%c1_96, %c1_97, %c0_98, %c0_99], %206 {strides = array<i32>} : memref<4x4x8x128xf32, #tpu.memory_space<vmem>>, vector<1x1x8x128xf32>,
      %c1_100 = arith.constant 1 : index
      %c2_101 = arith.constant 2 : index
      %c0_102 = arith.constant 0 : index
      %c0_103 = arith.constant 0 : index
      %207 = vector.load %arg8[%c1_100, %c2_101, %c0_102, %c0_103] : memref<4x4x8x128xf32, #tpu.memory_space<vmem>>, vector<1x1x8x128xf32>
      %208 = vector.shape_cast %207 : vector<1x1x8x128xf32> to vector<8x128xf32>
      %209 = arith.addf %208, %102 : vector<8x128xf32>
      %c1_104 = arith.constant 1 : index
      %c2_105 = arith.constant 2 : index
      %c0_106 = arith.constant 0 : index
      %c0_107 = arith.constant 0 : index
      %210 = vector.load %arg8[%c1_104, %c2_105, %c0_106, %c0_107] : memref<4x4x8x128xf32, #tpu.memory_space<vmem>>, vector<1x1x8x128xf32>
      %211 = vector.shape_cast %210 : vector<1x1x8x128xf32> to vector<8x128xf32>
      %212 = vector.shape_cast %209 : vector<8x128xf32> to vector<1x1x8x128xf32>
      tpu.vector_store %arg8[%c1_104, %c2_105, %c0_106, %c0_107], %212 {strides = array<i32>} : memref<4x4x8x128xf32, #tpu.memory_space<vmem>>, vector<1x1x8x128xf32>,
      %c2_108 = arith.constant 2 : index
      %c0_109 = arith.constant 0 : index
      %c0_110 = arith.constant 0 : index
      %c0_111 = arith.constant 0 : index
      %213 = vector.load %arg8[%c2_108, %c0_109, %c0_110, %c0_111] : memref<4x4x8x128xf32, #tpu.memory_space<vmem>>, vector<1x1x8x128xf32>
      %214 = vector.shape_cast %213 : vector<1x1x8x128xf32> to vector<8x128xf32>
      %215 = arith.addf %214, %129 : vector<8x128xf32>
      %c2_112 = arith.constant 2 : index
      %c0_113 = arith.constant 0 : index
      %c0_114 = arith.constant 0 : index
      %c0_115 = arith.constant 0 : index
      %216 = vector.load %arg8[%c2_112, %c0_113, %c0_114, %c0_115] : memref<4x4x8x128xf32, #tpu.memory_space<vmem>>, vector<1x1x8x128xf32>
      %217 = vector.shape_cast %216 : vector<1x1x8x128xf32> to vector<8x128xf32>
      %218 = vector.shape_cast %215 : vector<8x128xf32> to vector<1x1x8x128xf32>
      tpu.vector_store %arg8[%c2_112, %c0_113, %c0_114, %c0_115], %218 {strides = array<i32>} : memref<4x4x8x128xf32, #tpu.memory_space<vmem>>, vector<1x1x8x128xf32>,
      %c2_116 = arith.constant 2 : index
      %c1_117 = arith.constant 1 : index
      %c0_118 = arith.constant 0 : index
      %c0_119 = arith.constant 0 : index
      %219 = vector.load %arg8[%c2_116, %c1_117, %c0_118, %c0_119] : memref<4x4x8x128xf32, #tpu.memory_space<vmem>>, vector<1x1x8x128xf32>
      %220 = vector.shape_cast %219 : vector<1x1x8x128xf32> to vector<8x128xf32>
      %221 = arith.addf %220, %133 : vector<8x128xf32>
      %c2_120 = arith.constant 2 : index
      %c1_121 = arith.constant 1 : index
      %c0_122 = arith.constant 0 : index
      %c0_123 = arith.constant 0 : index
      %222 = vector.load %arg8[%c2_120, %c1_121, %c0_122, %c0_123] : memref<4x4x8x128xf32, #tpu.memory_space<vmem>>, vector<1x1x8x128xf32>
      %223 = vector.shape_cast %222 : vector<1x1x8x128xf32> to vector<8x128xf32>
      %224 = vector.shape_cast %221 : vector<8x128xf32> to vector<1x1x8x128xf32>
      tpu.vector_store %arg8[%c2_120, %c1_121, %c0_122, %c0_123], %224 {strides = array<i32>} : memref<4x4x8x128xf32, #tpu.memory_space<vmem>>, vector<1x1x8x128xf32>,
      %c2_124 = arith.constant 2 : index
      %c2_125 = arith.constant 2 : index
      %c0_126 = arith.constant 0 : index
      %c0_127 = arith.constant 0 : index
      %225 = vector.load %arg8[%c2_124, %c2_125, %c0_126, %c0_127] : memref<4x4x8x128xf32, #tpu.memory_space<vmem>>, vector<1x1x8x128xf32>
      %226 = vector.shape_cast %225 : vector<1x1x8x128xf32> to vector<8x128xf32>
      %227 = arith.addf %226, %136 : vector<8x128xf32>
      %c2_128 = arith.constant 2 : index
      %c2_129 = arith.constant 2 : index
      %c0_130 = arith.constant 0 : index
      %c0_131 = arith.constant 0 : index
      %228 = vector.load %arg8[%c2_128, %c2_129, %c0_130, %c0_131] : memref<4x4x8x128xf32, #tpu.memory_space<vmem>>, vector<1x1x8x128xf32>
      %229 = vector.shape_cast %228 : vector<1x1x8x128xf32> to vector<8x128xf32>
      %230 = vector.shape_cast %227 : vector<8x128xf32> to vector<1x1x8x128xf32>
      tpu.vector_store %arg8[%c2_128, %c2_129, %c0_130, %c0_131], %230 {strides = array<i32>} : memref<4x4x8x128xf32, #tpu.memory_space<vmem>>, vector<1x1x8x128xf32>,
      %c3_132 = arith.constant 3 : index
      %c0_133 = arith.constant 0 : index
      %c0_134 = arith.constant 0 : index
      %c0_135 = arith.constant 0 : index
      %231 = vector.load %arg8[%c3_132, %c0_133, %c0_134, %c0_135] : memref<4x4x8x128xf32, #tpu.memory_space<vmem>>, vector<1x1x8x128xf32>
      %232 = vector.shape_cast %231 : vector<1x1x8x128xf32> to vector<8x128xf32>
      %233 = arith.addf %232, %163 : vector<8x128xf32>
      %c3_136 = arith.constant 3 : index
      %c0_137 = arith.constant 0 : index
      %c0_138 = arith.constant 0 : index
      %c0_139 = arith.constant 0 : index
      %234 = vector.load %arg8[%c3_136, %c0_137, %c0_138, %c0_139] : memref<4x4x8x128xf32, #tpu.memory_space<vmem>>, vector<1x1x8x128xf32>
      %235 = vector.shape_cast %234 : vector<1x1x8x128xf32> to vector<8x128xf32>
      %236 = vector.shape_cast %233 : vector<8x128xf32> to vector<1x1x8x128xf32>
      tpu.vector_store %arg8[%c3_136, %c0_137, %c0_138, %c0_139], %236 {strides = array<i32>} : memref<4x4x8x128xf32, #tpu.memory_space<vmem>>, vector<1x1x8x128xf32>,
      %c3_140 = arith.constant 3 : index
      %c1_141 = arith.constant 1 : index
      %c0_142 = arith.constant 0 : index
      %c0_143 = arith.constant 0 : index
      %237 = vector.load %arg8[%c3_140, %c1_141, %c0_142, %c0_143] : memref<4x4x8x128xf32, #tpu.memory_space<vmem>>, vector<1x1x8x128xf32>
      %238 = vector.shape_cast %237 : vector<1x1x8x128xf32> to vector<8x128xf32>
      %239 = arith.addf %238, %167 : vector<8x128xf32>
      %c3_144 = arith.constant 3 : index
      %c1_145 = arith.constant 1 : index
      %c0_146 = arith.constant 0 : index
      %c0_147 = arith.constant 0 : index
      %240 = vector.load %arg8[%c3_144, %c1_145, %c0_146, %c0_147] : memref<4x4x8x128xf32, #tpu.memory_space<vmem>>, vector<1x1x8x128xf32>
      %241 = vector.shape_cast %240 : vector<1x1x8x128xf32> to vector<8x128xf32>
      %242 = vector.shape_cast %239 : vector<8x128xf32> to vector<1x1x8x128xf32>
      tpu.vector_store %arg8[%c3_144, %c1_145, %c0_146, %c0_147], %242 {strides = array<i32>} : memref<4x4x8x128xf32, #tpu.memory_space<vmem>>, vector<1x1x8x128xf32>,
      %c3_148 = arith.constant 3 : index
      %c2_149 = arith.constant 2 : index
      %c0_150 = arith.constant 0 : index
      %c0_151 = arith.constant 0 : index
      %243 = vector.load %arg8[%c3_148, %c2_149, %c0_150, %c0_151] : memref<4x4x8x128xf32, #tpu.memory_space<vmem>>, vector<1x1x8x128xf32>
      %244 = vector.shape_cast %243 : vector<1x1x8x128xf32> to vector<8x128xf32>
      %245 = arith.addf %244, %170 : vector<8x128xf32>
      %c3_152 = arith.constant 3 : index
      %c2_153 = arith.constant 2 : index
      %c0_154 = arith.constant 0 : index
      %c0_155 = arith.constant 0 : index
      %246 = vector.load %arg8[%c3_152, %c2_153, %c0_154, %c0_155] : memref<4x4x8x128xf32, #tpu.memory_space<vmem>>, vector<1x1x8x128xf32>
      %247 = vector.shape_cast %246 : vector<1x1x8x128xf32> to vector<8x128xf32>
      %248 = vector.shape_cast %245 : vector<8x128xf32> to vector<1x1x8x128xf32>
      tpu.vector_store %arg8[%c3_152, %c2_153, %c0_154, %c0_155], %248 {strides = array<i32>} : memref<4x4x8x128xf32, #tpu.memory_space<vmem>>, vector<1x1x8x128xf32>,
    } else {
    }
    return
  }
  func.func @transform_0(%arg0: i32, %arg1: i32, %arg2: memref<1xi32, #tpu.memory_space<smem>>) -> (i32, i32) {
    %c1_i32 = arith.constant 1 : i32
    %0 = arith.muli %arg0, %c1_i32 : i32
    %1 = arith.addi %0, %arg1 : i32
    %c0_i32 = arith.constant 0 : i32
    %2 = arith.minsi %1, %c0_i32 : i32
    %c0_i32_0 = arith.constant 0 : i32
    %c0_i32_1 = arith.constant 0 : i32
    return %2, %c0_i32_0 : i32, i32
  }
  func.func @transform_1(%arg0: i32, %arg1: i32, %arg2: memref<1xi32, #tpu.memory_space<smem>>) -> (i32, i32) {
    %c1_i32 = arith.constant 1 : i32
    %0 = arith.muli %arg0, %c1_i32 : i32
    %1 = arith.addi %0, %arg1 : i32
    %c0_i32 = arith.constant 0 : i32
    %2 = arith.minsi %1, %c0_i32 : i32
    %c0_i32_0 = arith.constant 0 : i32
    %c0_i32_1 = arith.constant 0 : i32
    return %2, %c0_i32_0 : i32, i32
  }
  func.func @transform_2(%arg0: i32, %arg1: i32, %arg2: memref<1xi32, #tpu.memory_space<smem>>) -> (i32, i32) {
    %c1_i32 = arith.constant 1 : i32
    %0 = arith.muli %arg0, %c1_i32 : i32
    %1 = arith.addi %0, %arg1 : i32
    %c0_i32 = arith.constant 0 : i32
    %2 = arith.minsi %1, %c0_i32 : i32
    %c0_i32_0 = arith.constant 0 : i32
    %c0_i32_1 = arith.constant 0 : i32
    return %2, %c0_i32_0 : i32, i32
  }
  func.func @transform_3(%arg0: i32, %arg1: i32, %arg2: memref<1xi32, #tpu.memory_space<smem>>) -> (i32, i32) {
    %c1_i32 = arith.constant 1 : i32
    %0 = arith.muli %arg0, %c1_i32 : i32
    %1 = arith.addi %0, %arg1 : i32
    %c0_i32 = arith.constant 0 : i32
    %2 = arith.minsi %1, %c0_i32 : i32
    %c0_i32_0 = arith.constant 0 : i32
    %c0_i32_1 = arith.constant 0 : i32
    return %2, %c0_i32_0 : i32, i32
  }
  func.func @transform_4(%arg0: i32, %arg1: i32, %arg2: memref<1xi32, #tpu.memory_space<smem>>) -> (i32, i32) {
    %c1_i32 = arith.constant 1 : i32
    %0 = arith.muli %arg0, %c1_i32 : i32
    %1 = arith.addi %0, %arg1 : i32
    %c0_i32 = arith.constant 0 : i32
    %2 = arith.minsi %1, %c0_i32 : i32
    %c0_i32_0 = arith.constant 0 : i32
    %c0_i32_1 = arith.constant 0 : i32
    return %2, %c0_i32_0 : i32, i32
  }
  func.func @transform_5(%arg0: i32, %arg1: i32, %arg2: memref<1xi32, #tpu.memory_space<smem>>) -> (i32, i32, i32, i32) {
    %c0_i32 = arith.constant 0 : i32
    %c0_i32_0 = arith.constant 0 : i32
    %c0_i32_1 = arith.constant 0 : i32
    %c0_i32_2 = arith.constant 0 : i32
    return %arg0, %c0_i32, %c0_i32_0, %c0_i32_1 : i32, i32, i32, i32
  }
}

</mosaic_0001>

<bundles_post_ra>
// kernel: _multi_bus_loss_impl.1
= control target key start
LH: loop header
LB: loop body
LE: loop exit
PB: predicated region body
PF: predicated region fallthrough
CT: control target
= control target key end

     0   :  { %v974_v0 = vmov 0.0   ;;  %s1640_s0 = inlined_call_operand.<no memory space> [shape: s32[1], index: 0, kind: input, shape index: {}]   ;;  %s1641_s1 = inlined_call_operand.vmem [shape: f32[16,128], index: 1, kind: input, shape index: {}]   ;;  %s1642_s2 = inlined_call_operand.vmem [shape: f32[16,128], index: 2, kind: input, shape index: {}]   ;;  %s1643_s3 = inlined_call_operand.vmem [shape: f32[16,128], index: 3, kind: input, shape index: {}]   ;;  %s1644_s4 = inlined_call_operand.vmem [shape: f32[16,128], index: 4, kind: input, shape index: {}]   ;;  %s1645_s5 = inlined_call_operand.vmem [shape: f32[16,128], index: 5, kind: input, shape index: {}]   ;;  %s1646_s6 = inlined_call_operand.vmem [shape: f32[4,4,8,128], index: 6, kind: output, shape index: {}]  }
   0x1   :  { %186 = vst [vmem:[%s1646_s6] sm:$0xff] %v974_v0  ;;  %187 = vst [vmem:[%s1646_s6 + $0x8] sm:$0xff] %v974_v0  ;;  %p826_p0 = scmp.lt.s32.totalorder %s1640_s0, 2048 }
   0x2   :  { %188 = vst [vmem:[%s1646_s6 + $0x10] sm:$0xff] %v974_v0  ;;  %189 = vst [vmem:[%s1646_s6 + $0x18] sm:$0xff] %v974_v0  ;;  %v1064_v1 = vld [vmem:[%s1645_s5] sm:$0xff] (!%p826_p0)  ;;  %v1069_v2 = vld [vmem:[%s1645_s5 + $0x8] sm:$0xff] (!%p826_p0) }
   0x3   :  { %190 = vst [vmem:[%s1646_s6 + $0x20] sm:$0xff] %v974_v0  ;;  %191 = vst [vmem:[%s1646_s6 + $0x28] sm:$0xff] %v974_v0  ;;  %210 = sbr.rel (%p826_p0) target bundleno = 73 (0x49), region = 29  ;;  %v213_v4 = vadd.f32 (!%p826_p0), %v1069_v2, %v1064_v1  ;;  %v1079_v5 = vld [vmem:[%s1641_s1] sm:$0xff] (!%p826_p0)  ;;  %v1084_v6 = vld [vmem:[%s1641_s1 + $0x8] sm:$0xff] (!%p826_p0) }
   0x4   :  { %192 = vst [vmem:[%s1646_s6 + $0x30] sm:$0xff] %v974_v0  ;;  %193 = vst [vmem:[%s1646_s6 + $0x38] sm:$0xff] %v974_v0  ;;  %v217_v7 = vand.u32 (!%p826_p0), 2147483647, %v1079_v5  ;;  %v218_v8 = vand.u32 (!%p826_p0), 2147483647, %v1084_v6  ;;  %v227_v27 = vmul.f32 (!%p826_p0), %v1079_v5, %v1064_v1  ;;  %v228_v32 = vmul.f32 (!%p826_p0), %v1084_v6, %v1069_v2 }
   0x5   :  { %194 = vst [vmem:[%s1646_s6 + $0x40] sm:$0xff] %v974_v0  ;;  %195 = vst [vmem:[%s1646_s6 + $0x48] sm:$0xff] %v974_v0  ;;  %v1091_v10 = vld [vmem:[%s1642_s2] sm:$0xff] (!%p826_p0)  ;;  %v1096_v13 = vld [vmem:[%s1642_s2 + $0x8] sm:$0xff] (!%p826_p0)  ;;  %v225_v24 = vmax.f32 (!%p826_p0), %v1079_v5, 0.0  ;;  %v226_v25 = vmax.f32 (!%p826_p0), %v1084_v6, 0.0 }
   0x6   :  { %196 = vst [vmem:[%s1646_s6 + $0x50] sm:$0xff] %v974_v0  ;;  %197 = vst [vmem:[%s1646_s6 + $0x58] sm:$0xff] %v974_v0  ;;  %v219_v11 = vsub.f32 (!%p826_p0), 0.0, %v217_v7  ;;  %v220_v12 = vsub.f32 (!%p826_p0), 0.0, %v218_v8  ;;  %v271_v14 = vand.u32 (!%p826_p0), 2147483647, %v1091_v10  ;;  %v281_v34 = vmul.f32 (!%p826_p0), %v1091_v10, %v1064_v1 }
   0x7   :  { %198 = vst [vmem:[%s1646_s6 + $0x60] sm:$0xff] %v974_v0  ;;  %199 = vst [vmem:[%s1646_s6 + $0x68] sm:$0xff] %v974_v0  ;;  %v272_v15 = vand.u32 (!%p826_p0), 2147483647, %v1096_v13  ;;  %v1106_v20 = vld [vmem:[%s1643_s3] sm:$0xff] (!%p826_p0)  ;;  %v1111_v21 = vld [vmem:[%s1643_s3 + $0x8] sm:$0xff] (!%p826_p0)  ;;  %v282_v36 = vmul.f32 (!%p826_p0), %v1096_v13, %v1069_v2  ;;  %v1139_v41 = vsub.f32 (!%p826_p0), %v225_v24, %v227_v27  ;;  %v1141_v43 = vsub.f32 (!%p826_p0), %v226_v25, %v228_v32 }
   0x8   :  { %200 = vst [vmem:[%s1646_s6 + $0x70] sm:$0xff] %v974_v0  ;;  %201 = vst [vmem:[%s1646_s6 + $0x78] sm:$0xff] %v974_v0  ;;  %v221_v16 = vmul.f32 (!%p826_p0), 1.442695, %v219_v11  ;;  %v223_v17 = vmul.f32 (!%p826_p0), 1.442695, %v220_v12  ;;  %v335_v50 = vmul.f32 (!%p826_p0), %v1106_v20, %v1064_v1  ;;  %v336_v51 = vmul.f32 (!%p826_p0), %v1111_v21, %v1069_v2 }
   0x9   :  { %v827_v3 = vld [vmem:[%s1646_s6 + $0x18] sm:$0xff] (!%p826_p0)  ;;  %v273_v18 = vsub.f32 (!%p826_p0), 0.0, %v271_v14  ;;  %v274_v19 = vsub.f32 (!%p826_p0), 0.0, %v272_v15  ;;  %v325_v23 = vand.u32 (!%p826_p0), 2147483647, %v1106_v20  ;;  %v1122_v30 = vld [vmem:[%s1644_s4] sm:$0xff] (!%p826_p0) }
   0xa   :  { %v433_v9 = vadd.f32 %v827_v3, %v213_v4  ;;  %878 = vpow2.f32 %v221_v16  ;;  %v326_v28 = vand.u32 2147483647, %v1111_v21  ;;  %v1127_v31 = vld [vmem:[%s1644_s4 + $0x8] sm:$0xff]  ;;  %v279_v33 = vmax.f32 %v1091_v10, 0.0 }
   0xb   :  { %v275_v22 = vmul.f32 1.442695, %v273_v18  ;;  %880 = vpow2.f32 %v223_v17  ;;  %v277_v26 = vmul.f32 1.442695, %v274_v19  ;;  %v327_v29 = vsub.f32 0.0, %v325_v23 }
   0xc   :  { %828 = vst [vmem:[%s1646_s6 + $0x18] sm:$0xff] %v433_v9  ;;  %v280_v35 = vmax.f32 %v1096_v13, 0.0  ;;  %v328_v37 = vsub.f32 0.0, %v326_v28  ;;  %v379_v39 = vand.u32 2147483647, %v1122_v30  ;;  %v1143_v44 = vsub.f32 %v279_v33, %v281_v34 }
   0xd   :  { %882 = vpow2.f32 %v275_v22  ;;  %v329_v38 = vmul.f32 1.442695, %v327_v29  ;;  %v380_v40 = vand.u32 2147483647, %v1127_v31  ;;  %v333_v48 = vmax.f32 %v1106_v20, 0.0 }
   0xe   :  { %884 = vpow2.f32 %v277_v26  ;;  %v331_v42 = vmul.f32 1.442695, %v328_v37  ;;  %v381_v45 = vsub.f32 0.0, %v379_v39  ;;  %v1145_v47 = vsub.f32 %v280_v35, %v282_v36 }
   0xf   :  { %886 = vpow2.f32 %v329_v38  ;;  %v382_v46 = vsub.f32 0.0, %v380_v40  ;;  %v334_v49 = vmax.f32 %v1111_v21, 0.0  ;;  %v387_v55 = vmax.f32 %v1122_v30, 0.0 }
  0x10   :  { %888 = vpow2.f32 %v331_v42  ;;  %v383_v52 = vmul.f32 1.442695, %v381_v45  ;;  %v388_v56 = vmax.f32 %v1127_v31, 0.0  ;;  %v389_v57 = vmul.f32 %v1122_v30, %v1064_v1 }
  0x11   :  { %v385_v53 = vmul.f32 1.442695, %v382_v46  ;;  %v390_v58 = vmul.f32 %v1127_v31, %v1069_v2  ;;  %v1159_v9 = vsub.f32 %v333_v48, %v335_v50  ;;  %v1161_v11 = vsub.f32 %v334_v49, %v336_v51 }
  0x12   :  { %890 = vpow2.f32 %v383_v52  ;;  %v1163_v15 = vsub.f32 %v387_v55, %v389_v57  ;;  %vm255_vm2 = vcmp.ge.f32.partialorder %v1079_v5, 0.0  ;;  %vm256_vm3 = vcmp.ge.f32.partialorder %v1084_v6, 0.0  ;;  %v829_v6 = vld [vmem:[%s1646_s6 + $0x8] sm:$0xff] }
  0x13   :  { %892 = vpow2.f32 %v385_v53  ;;  %v1165_v18 = vsub.f32 %v388_v56, %v390_v58  ;;  %vm309_vm6 = vcmp.ge.f32.partialorder %v1091_v10, 0.0  ;;  %vm310_vm7 = vcmp.ge.f32.partialorder %v1096_v13, 0.0  ;;  %v837_v13 = vld [vmem:[%s1646_s6 + $0x30] sm:$0xff] }
  0x14   :  { %v879_v54 = vpop.eup %878  ;;  %vm363_vm10 = vcmp.ge.f32.partialorder %v1106_v20, 0.0  ;;  %vm364_vm11 = vcmp.ge.f32.partialorder %v1111_v21, 0.0  ;;  %v843_v20 = vld [vmem:[%s1646_s6 + $0x50] sm:$0xff]  ;;  %vm417_vm14 = vcmp.ge.f32.partialorder %v1122_v30, 0.0  ;;  %vm418_vm15 = vcmp.ge.f32.partialorder %v1127_v31, 0.0  ;;  %v847_v30 = vld [vmem:[%s1646_s6 + $0x68] sm:$0xff] }
  0x15   :  { %v881_v59 = vpop.eup %880  ;;  %v231_v60 = vadd.f32 1.0, %v879_v54  ;;  %v234_v61 = vmul.f32 -0.5, %v879_v54  ;;  %v237_v62 = vand.u32 2147483647, %v879_v54 }
  0x16   :  { %v240_v0 = vadd.f32 1.0, %v881_v59  ;;  %v243_v3 = vmul.f32 -0.5, %v881_v59  ;;  %v246_v4 = vand.u32 2147483647, %v881_v59 }
  0x17   :  { %v883_v63 = vpop.eup %882  ;;  %894 = vlog2.f32 %v231_v60  ;;  %v235_v12 = vadd.f32 1.0, %v234_v61  ;;  %vm1167_vm0 = vcmp.lt.f32.partialorder %v237_v62, 0.0004427343 }
  0x18   :  { %v885_v7 = vpop.eup %884  ;;  %v285_v8 = vadd.f32 1.0, %v883_v63  ;;  %896 = vlog2.f32 %v240_v0  ;;  %v288_v14 = vmul.f32 -0.5, %v883_v63  ;;  %v244_v16 = vadd.f32 1.0, %v243_v3 }
  0x19   :  { %898 = vrcp.f32 %v231_v60  ;;  %v294_v17 = vadd.f32 1.0, %v885_v7  ;;  %v887_v19 = vpop.eup %886  ;;  %vm1171_vm1 = vcmp.lt.f32.partialorder %v246_v4, 0.0004427343  ;;  %v297_v24 = vmul.f32 -0.5, %v885_v7 }
  0x1a   :  { %900 = vrcp.f32 %v240_v0  ;;  %v289_v25 = vadd.f32 1.0, %v288_v14  ;;  %v291_v26 = vand.u32 2147483647, %v883_v63  ;;  %v339_v27 = vadd.f32 1.0, %v887_v19  ;;  %v889_v28 = vpop.eup %888 }
  0x1b   :  { %902 = vlog2.f32 %v285_v8  ;;  %v236_v29 = vmul.f32 %v879_v54, %v235_v12  ;;  %v300_v32 = vand.u32 2147483647, %v885_v7  ;;  %v342_v33 = vmul.f32 -0.5, %v887_v19 }
  0x1c   :  { %904 = vlog2.f32 %v294_v17  ;;  %v245_v34 = vmul.f32 %v881_v59, %v244_v16  ;;  %v298_v35 = vadd.f32 1.0, %v297_v24  ;;  %v348_v36 = vadd.f32 1.0, %v889_v28  ;;  %v891_v40 = vpop.eup %890 }
  0x1d   :  { %906 = vrcp.f32 %v285_v8  ;;  %v343_v37 = vadd.f32 1.0, %v342_v33  ;;  %v345_v38 = vand.u32 2147483647, %v887_v19  ;;  %v351_v39 = vmul.f32 -0.5, %v889_v28  ;;  %v1181_v48 = vpop.eup %892 }
  0x1e   :  { %908 = vrcp.f32 %v294_v17  ;;  %v290_v42 = vmul.f32 %v883_v63, %v289_v25  ;;  %vm1177_vm4 = vcmp.lt.f32.partialorder %v291_v26, 0.0004427343  ;;  %v354_v46 = vand.u32 2147483647, %v889_v28 }
  0x1f   :  { %910 = vlog2.f32 %v339_v27  ;;  %vm1183_vm5 = vcmp.lt.f32.partialorder %v300_v32, 0.0004427343  ;;  %v352_v50 = vadd.f32 1.0, %v351_v39  ;;  %v1189_v51 = vadd.f32 1.0, %v891_v40  ;;  %v831_v32 = vld [vmem:[%s1646_s6 + $0x10] sm:$0xff] }
  0x20   :  { %912 = vlog2.f32 %v348_v36  ;;  %v299_v53 = vmul.f32 %v885_v7, %v298_v35  ;;  %v1191_v54 = vmul.f32 %v887_v19, %v343_v37  ;;  %v396_v55 = vmul.f32 -0.5, %v891_v40 }
  0x21   :  { %v895_v52 = vpop.eup %894  ;;  %914 = vrcp.f32 %v339_v27  ;;  %vm1193_vm8 = vcmp.lt.f32.partialorder %v345_v38, 0.0004427343  ;;  %vm1197_vm9 = vcmp.lt.f32.partialorder %v354_v46, 0.0004427343  ;;  %v399_v60 = vand.u32 2147483647, %v891_v40 }
  0x22   :  { %v897_v56 = vpop.eup %896  ;;  %v233_v57 = vmul.f32 0.6931472, %v895_v52  ;;  %916 = vrcp.f32 %v348_v36  ;;  %v1202_v61 = vadd.f32 1.0, %v1181_v48  ;;  %v1204_v0 = vmul.f32 %v889_v28, %v352_v50 }
  0x23   :  { %v899_v62 = vpop.eup %898  ;;  %v242_v63 = vmul.f32 0.6931472, %v897_v56  ;;  %918 = vlog2.f32 %v1189_v51  ;;  %v397_v3 = vadd.f32 1.0, %v396_v55  ;;  %v405_v12 = vmul.f32 -0.5, %v1181_v48 }
  0x24   :  { %v901_v4 = vpop.eup %900  ;;  %v239_v7 = vsel %vm1167_vm0, %v236_v29, %v233_v57  ;;  %v257_v8 = vsub.f32 1.0, %v899_v62  ;;  %920 = vlog2.f32 %v1202_v61  ;;  %vm1221_vm12 = vcmp.lt.f32.partialorder %v399_v60, 0.0004427343 }
  0x25   :  { %v903_v14 = vpop.eup %902  ;;  %v248_v16 = vsel %vm1171_vm1, %v245_v34, %v242_v63  ;;  %v249_v17 = vadd.f32 %v239_v7, %v1139_v41  ;;  %v258_v19 = vsub.f32 1.0, %v901_v4  ;;  %v1215_v24 = vmul.f32 %v891_v40, %v397_v3  ;;  %v435_v41 = vld [vmem:[%s1646_s6] sm:$0xff] }
  0x26   :  { %v905_v25 = vpop.eup %904  ;;  %v250_v22 = vadd.f32 %v248_v16, %v1141_v43  ;;  %v259_v26 = vsel %vm255_vm2, %v899_v62, %v257_v8  ;;  %v287_v27 = vmul.f32 0.6931472, %v903_v14  ;;  %v1225_v23 = vadd.f32 1.0, %v405_v12  ;;  %v835_v14 = vld [vmem:[%s1646_s6 + $0x28] sm:$0xff] }
  0x27   :  { %v907_v29 = vpop.eup %906  ;;  %v260_v43 = vsel %vm256_vm3, %v901_v4, %v258_v19  ;;  %v263_v5 = vmul.f32 %v259_v26, %v1064_v1  ;;  %v296_v33 = vmul.f32 0.6931472, %v905_v25  ;;  %v408_v34 = vand.u32 2147483647, %v1181_v48 }
  0x28   :  { %v909_v35 = vpop.eup %908  ;;  %v261_v36 = vadd.f32 %v250_v22, %v249_v17  ;;  %v264_v37 = vmul.f32 %v260_v43, %v1069_v2  ;;  %v267_v38 = vadd.f32 %v260_v43, %v259_v26  ;;  %v293_v39 = vsel %vm1177_vm4, %v290_v42, %v287_v27  ;;  %v833_v42 = vld [vmem:[%s1646_s6 + $0x20] sm:$0xff] }
  0x29   :  { %v911_v40 = vpop.eup %910  ;;  %v302_v46 = vsel %vm1183_vm5, %v299_v53, %v296_v33  ;;  %v303_v50 = vadd.f32 %v293_v39, %v1143_v44  ;;  %v311_v52 = vsub.f32 1.0, %v907_v29  ;;  %v312_v55 = vsub.f32 1.0, %v909_v35 }
  0x2a   :  { %v913_v56 = vpop.eup %912  ;;  %v436_v57 = vadd.f32 %v435_v41, %v261_v36  ;;  %v265_v60 = vadd.f32 %v264_v37, %v263_v5  ;;  %v444_v62 = vadd.f32 %v831_v32, %v267_v38  ;;  %v304_v63 = vadd.f32 %v302_v46, %v1145_v47 }
  0x2b   :  { %v915_v45 = vpop.eup %914  ;;  %v313_v3 = vsel %vm309_vm6, %v907_v29, %v311_v52  ;;  %v314_v49 = vsel %vm310_vm7, %v909_v35, %v312_v55  ;;  %v341_v44 = vmul.f32 0.6931472, %v911_v40  ;;  %v350_v53 = vmul.f32 0.6931472, %v913_v56  ;;  %v841_v40 = vld [vmem:[%s1646_s6 + $0x48] sm:$0xff] }
  0x2c   :  { %v917_v4 = vpop.eup %916  ;;  %437 = vst [vmem:[%s1646_s6] sm:$0xff] %v436_v57  ;;  %v440_v7 = vadd.f32 %v829_v6, %v265_v60  ;;  %832 = vst [vmem:[%s1646_s6 + $0x10] sm:$0xff] %v444_v62  ;;  %v315_v47 = vadd.f32 %v304_v63, %v303_v50  ;;  %v317_v8 = vmul.f32 %v313_v3, %v1064_v1  ;;  %v365_v25 = vsub.f32 1.0, %v915_v45  ;;  %v849_v57 = vld [vmem:[%s1646_s6 + $0x70] sm:$0xff] }
  0x2d   :  { %v318_v10 = vmul.f32 %v314_v49, %v1069_v2  ;;  %v919_v12 = vpop.eup %918  ;;  %v321_v16 = vadd.f32 %v314_v49, %v313_v3  ;;  %v347_v17 = vsel %vm1193_vm8, %v1191_v54, %v341_v44  ;;  %v356_v19 = vsel %vm1197_vm9, %v1204_v0, %v350_v53  ;;  %v839_v54 = vld [vmem:[%s1646_s6 + $0x40] sm:$0xff] }
  0x2e   :  { %v921_v22 = vpop.eup %920  ;;  %830 = vst [vmem:[%s1646_s6 + $0x8] sm:$0xff] %v440_v7  ;;  %v448_v26 = vadd.f32 %v833_v42, %v315_v47  ;;  %v357_v29 = vadd.f32 %v347_v17, %v1159_v9  ;;  %v358_v41 = vadd.f32 %v356_v19, %v1161_v11  ;;  %v366_v58 = vsub.f32 1.0, %v917_v4 }
  0x2f   :  { %v319_v27 = vadd.f32 %v318_v10, %v317_v8  ;;  %v456_v43 = vadd.f32 %v837_v13, %v321_v16  ;;  %v367_v59 = vsel %vm363_vm10, %v915_v45, %v365_v25  ;;  %v395_v0 = vmul.f32 0.6931472, %v919_v12 }
  0x30   :  { %834 = vst [vmem:[%s1646_s6 + $0x20] sm:$0xff] %v448_v26  ;;  %v369_v32 = vadd.f32 %v358_v41, %v357_v29  ;;  %v371_v9 = vmul.f32 %v367_v59, %v1064_v1  ;;  %v404_v33 = vmul.f32 0.6931472, %v921_v22  ;;  %v368_v11 = vsel %vm364_vm11, %v917_v4, %v366_v58 }
  0x31   :  { %v452_v5 = vadd.f32 %v835_v14, %v319_v27  ;;  %838 = vst [vmem:[%s1646_s6 + $0x30] sm:$0xff] %v456_v43  ;;  %v401_v35 = vsel %vm1221_vm12, %v1215_v24, %v395_v0  ;;  %v407_v36 = vmul.f32 %v1181_v48, %v1225_v23  ;;  %vm409_vm13 = vcmp.lt.f32.partialorder %v408_v34, 0.0004427343 }
  0x32   :  { %v460_v37 = vadd.f32 %v839_v54, %v369_v32  ;;  %v372_v21 = vmul.f32 %v368_v11, %v1069_v2  ;;  %v375_v38 = vadd.f32 %v368_v11, %v367_v59  ;;  %v411_v39 = vadd.f32 %v401_v35, %v1163_v15  ;;  %v845_v15 = vld [vmem:[%s1646_s6 + $0x60] sm:$0xff] }
  0x33   :  { %836 = vst [vmem:[%s1646_s6 + $0x28] sm:$0xff] %v452_v5  ;;  %v410_v28 = vsel %vm409_vm13, %v407_v36, %v404_v33  ;;  %922 = vrcp.f32 %v1189_v51 }
  0x34   :  { %840 = vst [vmem:[%s1646_s6 + $0x40] sm:$0xff] %v460_v37  ;;  %v373_v48 = vadd.f32 %v372_v21, %v371_v9  ;;  %v468_v24 = vadd.f32 %v843_v20, %v375_v38  ;;  %v412_v23 = vadd.f32 %v410_v28, %v1165_v18  ;;  %924 = vrcp.f32 %v1202_v61 }
  0x36   :  { %v464_v34 = vadd.f32 %v841_v40, %v373_v48  ;;  %844 = vst [vmem:[%s1646_s6 + $0x50] sm:$0xff] %v468_v24  ;;  %v423_v51 = vadd.f32 %v412_v23, %v411_v39 }
  0x38   :  { %842 = vst [vmem:[%s1646_s6 + $0x48] sm:$0xff] %v464_v34  ;;  %v472_v6 = vadd.f32 %v845_v15, %v423_v51 }
  0x3a   :  { %846 = vst [vmem:[%s1646_s6 + $0x60] sm:$0xff] %v472_v6 }
  0x3d   :  { %v923_v18 = vpop.eup %922 }
  0x3e   :  { %v925_v61 = vpop.eup %924  ;;  %v419_v46 = vsub.f32 1.0, %v923_v18 }
  0x3f   :  { %v420_v50 = vsub.f32 1.0, %v925_v61 }
  0x40   :  { %v421_v52 = vsel %vm417_vm14, %v923_v18, %v419_v46 }
  0x41   :  { %v422_v55 = vsel %vm418_vm15, %v925_v61, %v420_v50  ;;  %v425_v56 = vmul.f32 %v421_v52, %v1064_v1 }
  0x42   :  { %v426_v60 = vmul.f32 %v422_v55, %v1069_v2  ;;  %v429_v62 = vadd.f32 %v422_v55, %v421_v52 }
  0x44   :  { %v427_v63 = vadd.f32 %v426_v60, %v425_v56  ;;  %v480_v45 = vadd.f32 %v849_v57, %v429_v62 }
  0x46   :  { %v476_v31 = vadd.f32 %v847_v30, %v427_v63  ;;  %850 = vst [vmem:[%s1646_s6 + $0x70] sm:$0xff] %v480_v45 }
  0x48   :  { %848 = vst [vmem:[%s1646_s6 + $0x68] sm:$0xff] %v476_v31 }
  0x49 PF:  { %p852_p1 = scmp.ge.s32.totalorder %s1640_s0, 2048 }
  0x4a   :  { %v489_v1 = vlaneseq (!%p852_p1)  ;;  %v501_v44 = vstv (!%p852_p1), %s1640_s0  ;;  %v508_v7 = vld [vmem:[%s1641_s1] sm:$0xff] (!%p852_p1)  ;;  %v487_v10 = vld [vmem:[%s1645_s5 + $0x8] sm:$0xff] (!%p852_p1)  ;;  %v853_v25 = vld [vmem:[%s1646_s6 + $0x18] sm:$0xff] (!%p852_p1) }
  0x4b   :  { %485 = sbr.rel (%p852_p1) target bundleno = 156 (0x9c), region = 33  ;;  %v486_v47 = vld [vmem:[%s1645_s5] sm:$0xff] (!%p852_p1)  ;;  %v509_v14 = vld [vmem:[%s1641_s1 + $0x8] sm:$0xff] (!%p852_p1) }
  0x4c   :  { %v490_v2 = vshrl.u32 (!%p852_p1), %v489_v1, 7  ;;  %v498_v42 = vand.u32 (!%p852_p1), 127, %v489_v1  ;;  %v566_v8 = vld [vmem:[%s1642_s2] sm:$0xff] (!%p852_p1)  ;;  %v567_v16 = vld [vmem:[%s1642_s2 + $0x8] sm:$0xff] (!%p852_p1) }
  0x4d   :  { %v624_v20 = vld [vmem:[%s1643_s3] sm:$0xff] (!%p852_p1)  ;;  %v625_v37 = vld [vmem:[%s1643_s3 + $0x8] sm:$0xff] (!%p852_p1) }
  0x4e   :  { %v491_v3 = vadd.s32 (!%p852_p1), 8, %v490_v2  ;;  %v495_v49 = vmul.u32 (!%p852_p1), 128, %v490_v2  ;;  %v682_v48 = vld [vmem:[%s1644_s4] sm:$0xff] (!%p852_p1)  ;;  %v683_v24 = vld [vmem:[%s1644_s4 + $0x8] sm:$0xff] (!%p852_p1) }
  0x50   :  { %v496_v53 = vmul.u32 (!%p852_p1), 128, %v491_v3  ;;  %v499_v4 = vadd.s32 (!%p852_p1), %v498_v42, %v495_v49 }
  0x52   :  { %v500_v13 = vadd.s32 %v498_v42, %v496_v53  ;;  %vm1361_vm0 = vcmp.lt.s32.totalorder %v499_v4, %v501_v44 }
  0x53   :  { %v1373_v17 = vsel %vm1361_vm0, %v508_v7, -1e+09  ;;  %v1385_v26 = vsel %vm1361_vm0, %v566_v8, -1e+09  ;;  %v1389_v27 = vsel %vm1361_vm0, %v486_v47, 0.0 }
  0x54   :  { %vm1375_vm1 = vcmp.lt.s32.totalorder %v500_v13, %v501_v44  ;;  %v512_v22 = vand.u32 2147483647, %v1373_v17  ;;  %v570_v0 = vand.u32 2147483647, %v1385_v26  ;;  %v1419_v39 = vsel %vm1361_vm0, %v624_v20, -1e+09 }
  0x55   :  { %v1393_v29 = vsel %vm1375_vm1, %v487_v10, 0.0  ;;  %v1397_v41 = vsel %vm1375_vm1, %v509_v14, -1e+09  ;;  %v1401_v43 = vsel %vm1375_vm1, %v567_v16, -1e+09  ;;  %v520_v15 = vmax.f32 %v1373_v17, 0.0 }
  0x56   :  { %v506_v54 = vadd.f32 %v1393_v29, %v1389_v27  ;;  %v513_v58 = vand.u32 2147483647, %v1397_v41  ;;  %v514_v59 = vsub.f32 0.0, %v512_v22  ;;  %v571_v33 = vand.u32 2147483647, %v1401_v43 }
  0x57   :  { %v572_v11 = vsub.f32 0.0, %v570_v0  ;;  %v1423_v40 = vsel %vm1375_vm1, %v625_v37, -1e+09  ;;  %v628_v28 = vand.u32 2147483647, %v1419_v39  ;;  %v522_v51 = vmul.f32 %v1373_v17, %v1389_v27 }
  0x58   :  { %v742_v5 = vadd.f32 %v853_v25, %v506_v54  ;;  %v515_v32 = vsub.f32 0.0, %v513_v58  ;;  %v516_v9 = vmul.f32 1.442695, %v514_v59  ;;  %v573_v36 = vsub.f32 0.0, %v571_v33 }
  0x59   :  { %v574_v21 = vmul.f32 1.442695, %v572_v11  ;;  %v629_v23 = vand.u32 2147483647, %v1423_v40  ;;  %v630_v34 = vsub.f32 0.0, %v628_v28  ;;  %v521_v46 = vmax.f32 %v1397_v41, 0.0 }
  0x5a   :  { %854 = vst [vmem:[%s1646_s6 + $0x18] sm:$0xff] %v742_v5  ;;  %926 = vpow2.f32 %v516_v9  ;;  %v518_v35 = vmul.f32 1.442695, %v515_v32  ;;  %v576_v38 = vmul.f32 1.442695, %v573_v36  ;;  %v523_v50 = vmul.f32 %v1397_v41, %v1393_v29 }
  0x5b   :  { %v631_v6 = vsub.f32 0.0, %v629_v23  ;;  %v1438_v18 = vsel %vm1361_vm0, %v682_v48, -1e+09  ;;  %v1442_v61 = vsel %vm1375_vm1, %v683_v24, -1e+09  ;;  %v578_v55 = vmax.f32 %v1385_v26, 0.0 }
  0x5c   :  { %928 = vpow2.f32 %v518_v35  ;;  %v632_v52 = vmul.f32 1.442695, %v630_v34  ;;  %v580_v56 = vmul.f32 %v1385_v26, %v1389_v27  ;;  %v686_v60 = vand.u32 2147483647, %v1438_v18 }
  0x5d   :  { %930 = vpow2.f32 %v574_v21  ;;  %v634_v57 = vmul.f32 1.442695, %v631_v6  ;;  %v687_v62 = vand.u32 2147483647, %v1442_v61  ;;  %v1452_v63 = vsub.f32 %v520_v15, %v522_v51 }
  0x5e   :  { %932 = vpow2.f32 %v576_v38  ;;  %v579_v45 = vmax.f32 %v1401_v43, 0.0  ;;  %v581_v31 = vmul.f32 %v1401_v43, %v1393_v29  ;;  %v1457_v1 = vsub.f32 %v521_v46, %v523_v50 }
  0x5f   :  { %934 = vpow2.f32 %v632_v52  ;;  %v636_v42 = vmax.f32 %v1419_v39, 0.0  ;;  %v638_v3 = vmul.f32 %v1419_v39, %v1389_v27  ;;  %v1462_v44 = vsub.f32 %v578_v55, %v580_v56 }
  0x60   :  { %936 = vpow2.f32 %v634_v57  ;;  %v637_v53 = vmax.f32 %v1423_v40, 0.0  ;;  %v639_v4 = vmul.f32 %v1423_v40, %v1393_v29  ;;  %v688_v7 = vsub.f32 0.0, %v686_v60 }
  0x61   :  { %v689_v13 = vsub.f32 0.0, %v687_v62  ;;  %v1467_v25 = vsub.f32 %v579_v45, %v581_v31  ;;  %v1469_v59 = vsub.f32 %v636_v42, %v638_v3  ;;  %vm550_vm2 = vcmp.ge.f32.partialorder %v1373_v17, 0.0 }
  0x62   :  { %v1472_v5 = vsub.f32 %v637_v53, %v639_v4  ;;  %v690_v32 = vmul.f32 1.442695, %v688_v7  ;;  %vm551_vm4 = vcmp.ge.f32.partialorder %v1397_v41, 0.0  ;;  %vm608_vm5 = vcmp.ge.f32.partialorder %v1385_v26, 0.0 }
  0x63   :  { %v692_v11 = vmul.f32 1.442695, %v689_v13  ;;  %vm609_vm8 = vcmp.ge.f32.partialorder %v1401_v43, 0.0  ;;  %vm666_vm11 = vcmp.ge.f32.partialorder %v1419_v39, 0.0  ;;  %vm667_vm13 = vcmp.ge.f32.partialorder %v1423_v40, 0.0  ;;  %v863_v43 = vld [vmem:[%s1646_s6 + $0x30] sm:$0xff] }
  0x64   :  { %v927_v30 = vpop.eup %926 }
  0x65   :  { %v526_v2 = vadd.f32 1.0, %v927_v30  ;;  %v529_v8 = vmul.f32 -0.5, %v927_v30  ;;  %v532_v16 = vand.u32 2147483647, %v927_v30 }
  0x66   :  { %v929_v49 = vpop.eup %928 }
  0x67   :  { %v931_v47 = vpop.eup %930  ;;  %938 = vlog2.f32 %v526_v2  ;;  %v535_v10 = vadd.f32 1.0, %v929_v49  ;;  %v538_v54 = vmul.f32 -0.5, %v929_v49  ;;  %v530_v9 = vadd.f32 1.0, %v529_v8 }
  0x68   :  { %v933_v14 = vpop.eup %932  ;;  %940 = vrcp.f32 %v526_v2  ;;  %v584_v22 = vadd.f32 1.0, %v931_v47  ;;  %v587_v58 = vmul.f32 -0.5, %v931_v47  ;;  %vm1474_vm3 = vcmp.lt.f32.partialorder %v532_v16, 0.0004427343 }
  0x69   :  { %942 = vlog2.f32 %v535_v10  ;;  %v593_v0 = vadd.f32 1.0, %v933_v14  ;;  %v596_v33 = vmul.f32 -0.5, %v933_v14  ;;  %v541_v35 = vand.u32 2147483647, %v929_v49  ;;  %v935_v37 = vpop.eup %934 }
  0x6a   :  { %944 = vrcp.f32 %v535_v10  ;;  %v590_v36 = vand.u32 2147483647, %v931_v47  ;;  %v539_v21 = vadd.f32 1.0, %v538_v54  ;;  %v588_v38 = vadd.f32 1.0, %v587_v58  ;;  %v937_v48 = vpop.eup %936 }
  0x6b   :  { %946 = vlog2.f32 %v584_v22  ;;  %v599_v28 = vand.u32 2147483647, %v933_v14  ;;  %v597_v24 = vadd.f32 1.0, %v596_v33  ;;  %v642_v23 = vadd.f32 1.0, %v935_v37 }
  0x6c   :  { %948 = vlog2.f32 %v593_v0  ;;  %v645_v15 = vmul.f32 -0.5, %v935_v37  ;;  %v531_v34 = vmul.f32 %v927_v30, %v530_v9  ;;  %v648_v51 = vand.u32 2147483647, %v935_v37 }
  0x6d   :  { %950 = vrcp.f32 %v584_v22  ;;  %v651_v6 = vadd.f32 1.0, %v937_v48  ;;  %v654_v46 = vmul.f32 -0.5, %v937_v48  ;;  %vm1480_vm6 = vcmp.lt.f32.partialorder %v541_v35, 0.0004427343 }
  0x6e   :  { %952 = vrcp.f32 %v593_v0  ;;  %vm1484_vm7 = vcmp.lt.f32.partialorder %v590_v36, 0.0004427343  ;;  %v646_v55 = vadd.f32 1.0, %v645_v15  ;;  %v540_v57 = vmul.f32 %v929_v49, %v539_v21  ;;  %v744_v36 = vld [vmem:[%s1646_s6] sm:$0xff] }
  0x6f   :  { %954 = vlog2.f32 %v642_v23  ;;  %v589_v60 = vmul.f32 %v931_v47, %v588_v38  ;;  %v657_v62 = vand.u32 2147483647, %v937_v48  ;;  %v598_v31 = vmul.f32 %v933_v14, %v597_v24 }
  0x70   :  { %956 = vlog2.f32 %v651_v6  ;;  %vm1489_vm9 = vcmp.lt.f32.partialorder %v599_v28, 0.0004427343  ;;  %vm1493_vm10 = vcmp.lt.f32.partialorder %v648_v51, 0.0004427343  ;;  %v655_v49 = vadd.f32 1.0, %v654_v46 }
  0x71   :  { %v939_v56 = vpop.eup %938  ;;  %958 = vrcp.f32 %v642_v23  ;;  %v1499_v8 = vmul.f32 %v935_v37, %v646_v55  ;;  %vm1505_vm12 = vcmp.lt.f32.partialorder %v657_v62, 0.0004427343 }
  0x72   :  { %v941_v30 = vpop.eup %940  ;;  %v528_v45 = vmul.f32 0.6931472, %v939_v56  ;;  %960 = vrcp.f32 %v651_v6  ;;  %v656_v21 = vmul.f32 %v937_v48, %v655_v49 }
  0x73   :  { %v943_v42 = vpop.eup %942  ;;  %v552_v3 = vsub.f32 1.0, %v941_v30  ;;  %962 = vpow2.f32 %v690_v32 }
  0x74   :  { %v945_v4 = vpop.eup %944  ;;  %v534_v7 = vsel %vm1474_vm3, %v531_v34, %v528_v45  ;;  %v537_v47 = vmul.f32 0.6931472, %v943_v42  ;;  %964 = vpow2.f32 %v692_v11  ;;  %v857_v11 = vld [vmem:[%s1646_s6 + $0x10] sm:$0xff]  ;;  %v855_v34 = vld [vmem:[%s1646_s6 + $0x8] sm:$0xff]  ;;  %vm725_vm3 = vcmp.ge.f32.partialorder %v1442_v61, 0.0 }
  0x75   :  { %v947_v10 = vpop.eup %946  ;;  %v544_v13 = vadd.f32 %v534_v7, %v1452_v63  ;;  %v553_v14 = vsub.f32 1.0, %v945_v4  ;;  %v554_v16 = vsel %vm550_vm2, %v941_v30, %v552_v3  ;;  %vm724_vm2 = vcmp.ge.f32.partialorder %v1438_v18, 0.0 }
  0x76   :  { %v949_v54 = vpop.eup %948  ;;  %v543_v58 = vsel %vm1480_vm6, %v540_v57, %v537_v47  ;;  %v556_v0 = vsel %vm1361_vm0, %v554_v16, 0.0  ;;  %v586_v9 = vmul.f32 0.6931472, %v947_v10  ;;  %v859_v57 = vld [vmem:[%s1646_s6 + $0x20] sm:$0xff] }
  0x77   :  { %v951_v63 = vpop.eup %950  ;;  %v545_v32 = vadd.f32 %v543_v58, %v1457_v1  ;;  %v555_v17 = vsel %vm551_vm4, %v945_v4, %v553_v14  ;;  %v560_v33 = vmul.f32 %v556_v0, %v1389_v27  ;;  %v595_v20 = vmul.f32 0.6931472, %v949_v54 }
  0x78   :  { %v953_v35 = vpop.eup %952  ;;  %v557_v37 = vsel %vm1375_vm1, %v555_v17, 0.0  ;;  %v592_v1 = vsel %vm1484_vm7, %v589_v60, %v586_v9  ;;  %v610_v41 = vsub.f32 1.0, %v951_v63 }
  0x79   :  { %v558_v38 = vadd.f32 %v545_v32, %v544_v13  ;;  %v561_v28 = vmul.f32 %v557_v37, %v1393_v29  ;;  %v564_v24 = vadd.f32 %v557_v37, %v556_v0  ;;  %v601_v23 = vsel %vm1489_vm9, %v598_v31, %v595_v20  ;;  %v955_v15 = vpop.eup %954  ;;  %v861_v13 = vld [vmem:[%s1646_s6 + $0x28] sm:$0xff]  ;;  %v869_v20 = vld [vmem:[%s1646_s6 + $0x50] sm:$0xff] }
  0x7a   :  { %v602_v51 = vadd.f32 %v592_v1, %v1462_v44  ;;  %v603_v6 = vadd.f32 %v601_v23, %v1467_v25  ;;  %v611_v46 = vsub.f32 1.0, %v953_v35  ;;  %v612_v48 = vsel %vm608_vm5, %v951_v63, %v610_v41  ;;  %v957_v50 = vpop.eup %956  ;;  %v867_v37 = vld [vmem:[%s1646_s6 + $0x48] sm:$0xff] }
  0x7b   :  { %v745_v52 = vadd.f32 %v744_v36, %v558_v38  ;;  %v562_v55 = vadd.f32 %v561_v28, %v560_v33  ;;  %v753_v56 = vadd.f32 %v857_v11, %v564_v24  ;;  %v614_v60 = vsel %vm1361_vm0, %v612_v48, 0.0  ;;  %v959_v62 = vpop.eup %958 }
  0x7c   :  { %v616_v30 = vadd.f32 %v603_v6, %v602_v51  ;;  %v613_v44 = vsel %vm609_vm8, %v953_v35, %v611_v46  ;;  %v618_v25 = vmul.f32 %v614_v60, %v1389_v27  ;;  %v644_v26 = vmul.f32 0.6931472, %v955_v15  ;;  %v961_v45 = vpop.eup %960 }
  0x7d   :  { %746 = vst [vmem:[%s1646_s6] sm:$0xff] %v745_v52  ;;  %v749_v31 = vadd.f32 %v855_v34, %v562_v55  ;;  %858 = vst [vmem:[%s1646_s6 + $0x10] sm:$0xff] %v753_v56  ;;  %v615_v2 = vsel %vm1375_vm1, %v613_v44, 0.0  ;;  %v653_v42 = vmul.f32 0.6931472, %v957_v50  ;;  %v668_v3 = vsub.f32 1.0, %v959_v62  ;;  %v963_v49 = vpop.eup %962 }
  0x7e   :  { %v757_v4 = vadd.f32 %v859_v57, %v616_v30  ;;  %v619_v7 = vmul.f32 %v615_v2, %v1393_v29  ;;  %v622_v47 = vadd.f32 %v615_v2, %v614_v60  ;;  %v650_v10 = vsel %vm1493_vm10, %v1499_v8, %v644_v26  ;;  %v965_v0 = vpop.eup %964 }
  0x7f   :  { %856 = vst [vmem:[%s1646_s6 + $0x8] sm:$0xff] %v749_v31  ;;  %v659_v14 = vsel %vm1505_vm12, %v656_v21, %v653_v42  ;;  %v660_v16 = vadd.f32 %v650_v10, %v1469_v59  ;;  %v669_v54 = vsub.f32 1.0, %v961_v45  ;;  %v670_v58 = vsel %vm666_vm11, %v959_v62, %v668_v3  ;;  %v865_v59 = vld [vmem:[%s1646_s6 + $0x40] sm:$0xff] }
  0x80   :  { %860 = vst [vmem:[%s1646_s6 + $0x20] sm:$0xff] %v757_v4  ;;  %v620_v53 = vadd.f32 %v619_v7, %v618_v25  ;;  %v765_v8 = vadd.f32 %v863_v43, %v622_v47  ;;  %v661_v9 = vadd.f32 %v659_v14, %v1472_v5  ;;  %v672_v63 = vsel %vm1361_vm0, %v670_v58, 0.0 }
  0x81   :  { %v671_v39 = vsel %vm667_vm13, %v961_v45, %v669_v54  ;;  %v676_v22 = vmul.f32 %v672_v63, %v1389_v27  ;;  %v700_v32 = vadd.f32 1.0, %v963_v49  ;;  %v703_v11 = vmul.f32 -0.5, %v963_v49  ;;  %v873_v54 = vld [vmem:[%s1646_s6 + $0x68] sm:$0xff] }
  0x82   :  { %v761_v17 = vadd.f32 %v861_v13, %v620_v53  ;;  %864 = vst [vmem:[%s1646_s6 + $0x30] sm:$0xff] %v765_v8  ;;  %v674_v33 = vadd.f32 %v661_v9, %v660_v16  ;;  %v673_v5 = vsel %vm1375_vm1, %v671_v39, 0.0  ;;  %v709_v1 = vadd.f32 1.0, %v965_v0 }
  0x83   :  { %v677_v35 = vmul.f32 %v673_v5, %v1393_v29  ;;  %v680_v40 = vadd.f32 %v673_v5, %v672_v63  ;;  %966 = vlog2.f32 %v700_v32  ;;  %v712_v28 = vmul.f32 -0.5, %v965_v0 }
  0x84   :  { %862 = vst [vmem:[%s1646_s6 + $0x28] sm:$0xff] %v761_v17  ;;  %v769_v36 = vadd.f32 %v865_v59, %v674_v33  ;;  %968 = vlog2.f32 %v709_v1  ;;  %v704_v24 = vadd.f32 1.0, %v703_v11  ;;  %v706_v23 = vand.u32 2147483647, %v963_v49 }
  0x85   :  { %v678_v41 = vadd.f32 %v677_v35, %v676_v22  ;;  %v777_v21 = vadd.f32 %v869_v20, %v680_v40  ;;  %970 = vrcp.f32 %v700_v32  ;;  %v694_v15 = vmax.f32 %v1438_v18, 0.0 }
  0x86   :  { %866 = vst [vmem:[%s1646_s6 + $0x40] sm:$0xff] %v769_v36  ;;  %972 = vrcp.f32 %v709_v1  ;;  %v696_v34 = vmul.f32 %v1438_v18, %v1389_v27  ;;  %v713_v51 = vadd.f32 1.0, %v712_v28  ;;  %v695_v6 = vmax.f32 %v1442_v61, 0.0 }
  0x87   :  { %v773_v38 = vadd.f32 %v867_v37, %v678_v41  ;;  %870 = vst [vmem:[%s1646_s6 + $0x50] sm:$0xff] %v777_v21  ;;  %v697_v46 = vmul.f32 %v1442_v61, %v1393_v29  ;;  %v705_v48 = vmul.f32 %v963_v49, %v704_v24  ;;  %v715_v50 = vand.u32 2147483647, %v965_v0  ;;  %v871_v49 = vld [vmem:[%s1646_s6 + $0x60] sm:$0xff]  ;;  %v875_v61 = vld [vmem:[%s1646_s6 + $0x70] sm:$0xff] }
  0x88   :  { %vm707_vm14 = vcmp.lt.f32.partialorder %v706_v23, 0.0004427343  ;;  %v698_v55 = vsub.f32 %v694_v15, %v696_v34  ;;  %v714_v57 = vmul.f32 %v965_v0, %v713_v51 }
  0x89   :  { %868 = vst [vmem:[%s1646_s6 + $0x48] sm:$0xff] %v773_v38  ;;  %v699_v62 = vsub.f32 %v695_v6, %v697_v46  ;;  %vm716_vm15 = vcmp.lt.f32.partialorder %v715_v50, 0.0004427343 }
  0x8d   :  { %v967_v52 = vpop.eup %966 }
  0x8e   :  { %v702_v56 = vmul.f32 0.6931472, %v967_v52  ;;  %v969_v60 = vpop.eup %968 }
  0x8f   :  { %v971_v44 = vpop.eup %970  ;;  %v711_v25 = vmul.f32 0.6931472, %v969_v60 }
  0x90   :  { %v708_v30 = vsel %vm707_vm14, %v705_v48, %v702_v56  ;;  %v973_v26 = vpop.eup %972  ;;  %v726_v31 = vsub.f32 1.0, %v971_v44 }
  0x91   :  { %v718_v45 = vadd.f32 %v708_v30, %v698_v55  ;;  %v717_v2 = vsel %vm716_vm15, %v714_v57, %v711_v25  ;;  %v727_v43 = vsub.f32 1.0, %v973_v26 }
  0x92   :  { %v719_v42 = vadd.f32 %v717_v2, %v699_v62  ;;  %v728_v3 = vsel %vm724_vm2, %v971_v44, %v726_v31 }
  0x93   :  { %v729_v4 = vsel %vm725_vm3, %v973_v26, %v727_v43  ;;  %v730_v7 = vsel %vm1361_vm0, %v728_v3, 0.0 }
  0x94   :  { %v732_v47 = vadd.f32 %v719_v42, %v718_v45  ;;  %v731_v18 = vsel %vm1375_vm1, %v729_v4, 0.0  ;;  %v734_v10 = vmul.f32 %v730_v7, %v1389_v27 }
  0x95   :  { %v735_v13 = vmul.f32 %v731_v18, %v1393_v29  ;;  %v738_v14 = vadd.f32 %v731_v18, %v730_v7 }
  0x96   :  { %v781_v16 = vadd.f32 %v871_v49, %v732_v47 }
  0x97   :  { %v736_v12 = vadd.f32 %v735_v13, %v734_v10  ;;  %v789_v58 = vadd.f32 %v875_v61, %v738_v14 }
  0x98   :  { %872 = vst [vmem:[%s1646_s6 + $0x60] sm:$0xff] %v781_v16 }
  0x99   :  { %v785_v19 = vadd.f32 %v873_v54, %v736_v12  ;;  %876 = vst [vmem:[%s1646_s6 + $0x70] sm:$0xff] %v789_v58 }
  0x9b   :  { %874 = vst [vmem:[%s1646_s6 + $0x68] sm:$0xff] %v785_v19 }
  0x9c PF:  {}

</bundles_post_ra>
